<compile_context>
chip_gen: v7x
topology: tpu7x:2x2x1
jax: 0.10.0
libtpu: 0.0.40
codegen_flags: <defaults>
</compile_context>

<pallas_src>
import functools

import jax
import jax.numpy as jnp
from jax import lax
from jax.experimental import pallas as pl
from jax.experimental.pallas import tpu as pltpu


# ----------------------------------------------------------------------------
# Fused Pallas kernel: all pyramid levels for one batch element per grid step.
# ----------------------------------------------------------------------------
def _verconv_kernel(x_ref, w_ref, b_ref, *rest, levels, H, W, KM, stride):
    # x_ref   : (1, Cin, H*W)            bf16   NCHW input with HW flattened on lanes
    # w_ref   : (Cout_total, KM*KM*Cin)  bf16   stacked conv weights (see wrapper)
    # b_ref   : (Cout_total, 1)          f32    concatenated conv biases
    # rest    : fc1_0, fc2_0, ..., fc1_{L-1}, fc2_{L-1} (SE weights, f32, tiny),
    #           o_ref   (1, Cout_total, H*W) f32,
    #           xs_ref  (Cin, HW + 2*guard)  bf16 scratch  (zero-guarded flat image),
    #           col_ref (KM*KM*Cin, H*W)     bf16 scratch  (im2col matrix).
    L = len(levels)
    fc_refs = rest[:2 * L]
    o_ref = rest[2 * L]
    xs_ref = rest[2 * L + 1]
    col_ref = rest[2 * L + 2]

    cin = x_ref.shape[1]
    HW = H * W
    padM = KM // 2
    q0 = padM * W + padM                     # flat offset of image pixel (0, 0)

    # Stage a zero-guarded, flattened copy of the image in VMEM.  Reads that
    # fall outside the image in H land in the zero guards; out-of-range columns
    # are handled by the per-tap lane mask below.
    xs_ref[...] = jnp.zeros_like(xs_ref)
    xs_ref[:, q0:q0 + HW] = x_ref[0]

    # Lane position within a row (2-D iota, as required on TPU).
    xpos = lax.broadcasted_iota(jnp.int32, (1, HW), 1) % W

    # Build the im2col matrix: one lane-shifted copy of the image per tap of the
    # largest kernel.  All levels reuse the same matrix (smaller kernels are
    # zero-embedded at the center of the tap grid on the weight side).
    for kh in range(KM):
        for kw in range(KM):
            dh, dw = kh - padM, kw - padM
            start = q0 + dh * W + dw                     # static, always in bounds
            shifted = xs_ref[:, start:start + HW]        # (Cin, HW)
            if dw > 0:
                shifted = jnp.where(xpos < W - dw, shifted,
                                    jnp.zeros_like(shifted))
            elif dw < 0:
                shifted = jnp.where(xpos >= -dw, shifted,
                                    jnp.zeros_like(shifted))
            t = kh * KM + kw
            col_ref[t * cin:(t + 1) * cin, :] = shifted

    # One deep matmul for the whole concatenated conv output.
    acc = jnp.dot(w_ref[...], col_ref[...],
                  preferred_element_type=jnp.float32)    # (Cout_total, HW)
    acc = acc + b_ref[...]                               # + (Cout_total, 1)

    # SE pooling: for stride > 1 only the strided output positions contribute
    # (the wrapper subsamples spatially after the kernel).
    if stride == 1:
        inv_n = 1.0 / HW
        pool_mask = None
    else:
        ho = (H - 1) // stride + 1
        wo = (W - 1) // stride + 1
        inv_n = 1.0 / (ho * wo)
        idx = lax.broadcasted_iota(jnp.int32, (1, HW), 1)
        pool_mask = ((idx // W) % stride == 0) & ((idx % W) % stride == 0)

    # Per-level SE gating, written straight into the concatenated output slice.
    for l, (off, cl) in enumerate(levels):
        a = acc[off:off + cl, :]                                   # (cl, HW)
        if pool_mask is None:
            pooled = jnp.sum(a, axis=1, keepdims=True) * inv_n     # (cl, 1)
        else:
            pooled = jnp.sum(jnp.where(pool_mask, a, 0.0), axis=1,
                             keepdims=True) * inv_n
        h = jnp.maximum(jnp.dot(fc_refs[2 * l][...], pooled,
                                preferred_element_type=jnp.float32), 0.0)
        gate = jax.nn.sigmoid(jnp.dot(fc_refs[2 * l + 1][...], h,
                                      preferred_element_type=jnp.float32))
        o_ref[0, off:off + cl, :] = (a * gate).astype(o_ref.dtype)


# ----------------------------------------------------------------------------
# Wrapper: NCHW in -> NCHW out, one pallas_call for all levels.
# ----------------------------------------------------------------------------
def verconv_separated_forward(x_nchw, fused, *, stride=1):
    B, Cin, H, W = x_nchw.shape
    HW = H * W
    KM = fused["KM"]
    padM = KM // 2
    levels = fused["levels"]
    cout_total = fused["wmat"].shape[0]

    x_flat = x_nchw.astype(jnp.bfloat16).reshape(B, Cin, HW)

    in_specs = [
        pl.BlockSpec((1, Cin, HW), lambda b: (b, 0, 0)),
        pl.BlockSpec((cout_total, KM * KM * Cin), lambda b: (0, 0)),
        pl.BlockSpec((cout_total, 1), lambda b: (0, 0)),
    ]
    args = [x_flat, fused["wmat"], fused["bias"]]
    for fc1, fc2 in zip(fused["fc1s"], fused["fc2s"]):
        in_specs.append(pl.BlockSpec(fc1.shape, lambda b: (0, 0)))
        in_specs.append(pl.BlockSpec(fc2.shape, lambda b: (0, 0)))
        args += [fc1, fc2]

    guard = padM * W + padM
    kernel = functools.partial(_verconv_kernel, levels=levels, H=H, W=W,
                               KM=KM, stride=stride)
    out = pl.pallas_call(
        kernel,
        out_shape=jax.ShapeDtypeStruct((B, cout_total, HW), jnp.float32),
        grid=(B,),
        in_specs=in_specs,
        out_specs=pl.BlockSpec((1, cout_total, HW), lambda b: (b, 0, 0)),
        scratch_shapes=[
            pltpu.VMEM((Cin, HW + 2 * guard), jnp.bfloat16),   # guarded flat image
            pltpu.VMEM((KM * KM * Cin, HW), jnp.bfloat16),     # im2col matrix
        ],
        compiler_params=pltpu.CompilerParams(
            dimension_semantics=("parallel",),
            vmem_limit_bytes=32 * 1024 * 1024),
    )(*args)

    y = out.reshape(B, cout_total, H, W)
    if stride > 1:
        # Strided conv == stride-1 conv subsampled at the strided positions
        # (padding = K//2, odd K); SE pooling above already used only those.
        y = y[:, :, ::stride, ::stride]
    return y


# ----------------------------------------------------------------------------
# Parameter construction (mirrors the PyTorch module's __init__ shapes).
# ----------------------------------------------------------------------------
def make_level_params(key, cin, cout, k, groups, reduction):
    k1, k2, k3, k4 = jax.random.split(key, 4)
    cin_g = cin // groups
    cr = cout // reduction
    # PyTorch Conv2d weight layout: (Cout, Cin/groups, K, K)
    wg = jax.random.normal(k1, (cout, cin_g, k, k), jnp.float32) * (
        1.0 / (cin_g * k * k) ** 0.5)
    b = jax.random.normal(k2, (cout,), jnp.float32) * 0.1
    # nn.Linear weights (no bias): fc1 (Cr, Cout), fc2 (Cout, Cr)
    fc1 = jax.random.normal(k3, (cr, cout), jnp.float32) * (1.0 / cout ** 0.5)
    fc2 = jax.random.normal(k4, (cout, cr), jnp.float32) * (1.0 / cr ** 0.5)
    return dict(wg=wg, b=b, fc1=fc1, fc2=fc2, k=k, groups=groups)


def make_verconv_params(key, in_channels, out_channels, num_levels,
                        reduction_rate):
    kernel_sizes = [3, 5, 7, 9]
    num_groups = [1, 4, 8, 16]
    assert out_channels % 4 == 0 and num_levels <= 4
    if num_levels == 4:
        pyr = [out_channels // 4] * 4
    elif num_levels == 3:
        pyr = [out_channels // 4] * 2 + [out_channels // 2]
    elif num_levels == 2:
        pyr = [out_channels // 2] * 2
    else:
        pyr = [out_channels]
    keys = jax.random.split(key, num_levels)
    return [make_level_params(keys[l], in_channels, pyr[l], kernel_sizes[l],
                              num_groups[l], reduction_rate)
            for l in range(num_levels)]


def build_fused_params(level_params, in_channels):
    """Stack every level into one (Cout_total, KM*KM*Cin) conv weight.

    Groups are embedded block-diagonally along Cin and kernels smaller than KM
    are zero-embedded at the center of the KM x KM tap grid -- an exact
    re-expression of the grouped convs.
    TODO(synk): keep per-group weights for large channel counts (block-diag
    inflation wastes MXU FLOPs when per-group channels are non-trivial).
    """
    KM = max(p["k"] for p in level_params)
    wmats, biases, fc1s, fc2s, levels = [], [], [], [], []
    off = 0
    for p in level_params:
        k, g = p["k"], p["groups"]
        cout = p["wg"].shape[0]
        cin_g = in_channels // g
        cout_g = cout // g
        d = (KM - k) // 2
        wd = jnp.zeros((KM, KM, in_channels, cout), jnp.float32)
        for gi in range(g):
            blk = p["wg"][gi * cout_g:(gi + 1) * cout_g]   # (cout_g, cin_g, k, k)
            wd = wd.at[d:d + k, d:d + k,
                       gi * cin_g:(gi + 1) * cin_g,
                       gi * cout_g:(gi + 1) * cout_g].set(
                jnp.transpose(blk, (2, 3, 1, 0)))
        wmats.append(wd.reshape(KM * KM * in_channels, cout).T)
        biases.append(p["b"])
        fc1s.append(p["fc1"])
        fc2s.append(p["fc2"])
        levels.append((off, cout))
        off += cout
    return dict(
        KM=KM,
        wmat=jnp.concatenate(wmats, axis=0).astype(jnp.bfloat16),
        bias=jnp.concatenate(biases).reshape(-1, 1).astype(jnp.float32),
        fc1s=fc1s, fc2s=fc2s, levels=tuple(levels))


# ----------------------------------------------------------------------------
# Pure-JAX reference (same bf16-rounded conv inputs, f32 accumulation).
# ----------------------------------------------------------------------------
def _ref_level(x_nchw, p, stride):
    pad = p["k"] // 2
    xb = x_nchw.astype(jnp.bfloat16).astype(jnp.float32)
    wb = p["wg"].astype(jnp.bfloat16).astype(jnp.float32)
    y = lax.conv_general_dilated(
        xb, wb, window_strides=(stride, stride),
        padding=[(pad, pad), (pad, pad)],
        feature_group_count=p["groups"],
        dimension_numbers=("NCHW", "OIHW", "NCHW"))
    y = y + p["b"][None, :, None, None]
    s = jnp.mean(y, axis=(2, 3))
    h = jnp.maximum(s @ p["fc1"].T, 0.0)
    g = jax.nn.sigmoid(h @ p["fc2"].T)
    return y * g[:, :, None, None]


def verconv_separated_ref(x_nchw, params, *, stride=1):
    return jnp.concatenate([_ref_level(x_nchw, p, stride) for p in params],
                           axis=1)


if __name__ == "__main__":
    # VerConvSeparated(in_channels=16, out_channels=16, num_levels=2, stride=1,
    # reduction_rate=4): levels (k=3, groups=1, cout=8), (k=5, groups=4, cout=8).
    B, C, H, W = 2, 16, 16, 16
    out_channels, num_levels, stride, reduction = 16, 2, 1, 4

    key = jax.random.PRNGKey(0)
    kx, kp = jax.random.split(key)
    x = jax.random.normal(kx, (B, C, H, W), jnp.float32)

    params = make_verconv_params(kp, C, out_channels, num_levels, reduction)
    fused = build_fused_params(params, C)

    y = jax.block_until_ready(verconv_separated_forward(x, fused, stride=stride))
    assert y.shape == (B, out_channels, H, W), y.shape

    y_ref = jax.block_until_ready(verconv_separated_ref(x, params, stride=stride))
    max_err = float(jnp.max(jnp.abs(y - y_ref)))
    # Tightened vs. the previous 0.1 tolerance (same bf16-rounded inputs on
    # both sides; remaining error is f32 accumulation order + EUP sigmoid).
    assert max_err < 2e-2, f"mismatch vs reference: {max_err}"

    print("KERNEL_OK")
</pallas_src>

<mosaic_0001>
module attributes {stable_mosaic.version = 11 : i64} {
  func.func @_verconv_kernel(%arg0: i32, %arg1: memref<1x16x256xbf16, #tpu.memory_space<vmem>>, %arg2: memref<16x400xbf16, #tpu.memory_space<vmem>>, %arg3: memref<16x1xf32, #tpu.memory_space<vmem>>, %arg4: memref<2x8xf32, #tpu.memory_space<vmem>>, %arg5: memref<8x2xf32, #tpu.memory_space<vmem>>, %arg6: memref<2x8xf32, #tpu.memory_space<vmem>>, %arg7: memref<8x2xf32, #tpu.memory_space<vmem>>, %arg8: memref<1x16x256xf32, #tpu.memory_space<vmem>>, %arg9: memref<16x324xbf16, #tpu.memory_space<vmem>>, %arg10: memref<400x256xbf16, #tpu.memory_space<vmem>>) attributes {dimension_semantics = [#tpu.dimension_semantics<parallel>], iteration_bounds = array<i64: 2>, scalar_prefetch = 0 : i64, scratch_operands = 2 : i64, tpu.core_type = #tpu.core_type<tc>, window_params = [{transform_indices = @transform_0, window_bounds = array<i64: 1, 16, 256>}, {pipeline_mode = #tpu.pipeline_mode<synchronous>, transform_indices = @transform_1, window_bounds = array<i64: 16, 400>}, {pipeline_mode = #tpu.pipeline_mode<synchronous>, transform_indices = @transform_2, window_bounds = array<i64: 16, 1>}, {pipeline_mode = #tpu.pipeline_mode<synchronous>, transform_indices = @transform_3, window_bounds = array<i64: 2, 8>}, {pipeline_mode = #tpu.pipeline_mode<synchronous>, transform_indices = @transform_4, window_bounds = array<i64: 8, 2>}, {pipeline_mode = #tpu.pipeline_mode<synchronous>, transform_indices = @transform_5, window_bounds = array<i64: 2, 8>}, {pipeline_mode = #tpu.pipeline_mode<synchronous>, transform_indices = @transform_6, window_bounds = array<i64: 8, 2>}, {transform_indices = @transform_7, window_bounds = array<i64: 1, 16, 256>}]} {
    %cst = arith.constant 0.000000e+00 : bf16
    %0 = vector.broadcast %cst : bf16 to vector<16x324xbf16>
    %c0 = arith.constant 0 : index
    %c0_0 = arith.constant 0 : index
    %1 = vector.load %arg9[%c0, %c0_0] : memref<16x324xbf16, #tpu.memory_space<vmem>>, vector<16x324xbf16>
    tpu.vector_store %arg9[%c0, %c0_0], %0 {strides = array<i32>} : memref<16x324xbf16, #tpu.memory_space<vmem>>, vector<16x324xbf16>,
    %c0_1 = arith.constant 0 : index
    %c0_2 = arith.constant 0 : index
    %c0_3 = arith.constant 0 : index
    %2 = vector.load %arg1[%c0_1, %c0_2, %c0_3] : memref<1x16x256xbf16, #tpu.memory_space<vmem>>, vector<1x16x256xbf16>
    %3 = vector.shape_cast %2 : vector<1x16x256xbf16> to vector<16x256xbf16>
    %c0_4 = arith.constant 0 : index
    %c34 = arith.constant 34 : index
    %4 = vector.load %arg9[%c0_4, %c34] : memref<16x324xbf16, #tpu.memory_space<vmem>>, vector<16x256xbf16>
    tpu.vector_store %arg9[%c0_4, %c34], %3 {strides = array<i32>} : memref<16x324xbf16, #tpu.memory_space<vmem>>, vector<16x256xbf16>,
    %5 = tpu.iota {dimensions = array<i32: 1>} : vector<1x256xi32>
    %c16_i32 = arith.constant 16 : i32
    %c0_i32 = arith.constant 0 : i32
    %6 = arith.cmpi eq, %c16_i32, %c0_i32 : i32
    %c1_i32 = arith.constant 1 : i32
    %7 = arith.select %6, %c1_i32, %c16_i32 : i32
    %8 = vector.broadcast %7 : i32 to vector<1x256xi32>
    %9 = arith.remsi %5, %8 : vector<1x256xi32>
    %c0_i32_5 = arith.constant 0 : i32
    %10 = vector.broadcast %c0_i32_5 : i32 to vector<1x256xi32>
    %11 = arith.cmpi ne, %9, %10 : vector<1x256xi32>
    %c0_i32_6 = arith.constant 0 : i32
    %12 = vector.broadcast %c0_i32_6 : i32 to vector<1x256xi32>
    %13 = arith.cmpi slt, %9, %12 : vector<1x256xi32>
    %c0_i32_7 = arith.constant 0 : i32
    %14 = arith.cmpi slt, %7, %c0_i32_7 : i32
    %15 = vector.broadcast %14 : i1 to vector<1x256xi1>
    %16 = vector.broadcast %15 : vector<1x256xi1> to vector<1x256xi1>
    %17 = arith.xori %13, %16 : vector<1x256xi1>
    %18 = arith.andi %17, %11 : vector<1x256xi1>
    %19 = vector.broadcast %7 : i32 to vector<1x256xi32>
    %20 = arith.addi %9, %19 : vector<1x256xi32>
    %21 = arith.select %18, %20, %9 : vector<1x256xi1>, vector<1x256xi32>
    %c0_8 = arith.constant 0 : index
    %c0_9 = arith.constant 0 : index
    %22 = vector.load %arg9[%c0_8, %c0_9] : memref<16x324xbf16, #tpu.memory_space<vmem>>, vector<16x256xbf16>
    %c2_i32 = arith.constant 2 : i32
    %23 = vector.broadcast %c2_i32 : i32 to vector<1x256xi32>
    %24 = arith.cmpi sge, %21, %23 : vector<1x256xi32>
    %cst_10 = arith.constant 0.000000e+00 : bf16
    %25 = vector.broadcast %cst_10 : bf16 to vector<16x256xbf16>
    %26 = vector.shape_cast %24 : vector<1x256xi1> to vector<1x256xi1>
    %27 = vector.broadcast %26 : vector<1x256xi1> to vector<16x256xi1>
    %28 = arith.select %27, %22, %25 : vector<16x256xi1>, vector<16x256xbf16>
    %c0_11 = arith.constant 0 : index
    %c0_12 = arith.constant 0 : index
    %29 = vector.load %arg10[%c0_11, %c0_12] : memref<400x256xbf16, #tpu.memory_space<vmem>>, vector<16x256xbf16>
    tpu.vector_store %arg10[%c0_11, %c0_12], %28 {strides = array<i32>} : memref<400x256xbf16, #tpu.memory_space<vmem>>, vector<16x256xbf16>,
    %c0_13 = arith.constant 0 : index
    %c1 = arith.constant 1 : index
    %30 = vector.load %arg9[%c0_13, %c1] : memref<16x324xbf16, #tpu.memory_space<vmem>>, vector<16x256xbf16>
    %c1_i32_14 = arith.constant 1 : i32
    %31 = vector.broadcast %c1_i32_14 : i32 to vector<1x256xi32>
    %32 = arith.cmpi sge, %21, %31 : vector<1x256xi32>
    %cst_15 = arith.constant 0.000000e+00 : bf16
    %33 = vector.broadcast %cst_15 : bf16 to vector<16x256xbf16>
    %34 = vector.shape_cast %32 : vector<1x256xi1> to vector<1x256xi1>
    %35 = vector.broadcast %34 : vector<1x256xi1> to vector<16x256xi1>
    %36 = arith.select %35, %30, %33 : vector<16x256xi1>, vector<16x256xbf16>
    %c16 = arith.constant 16 : index
    %c0_16 = arith.constant 0 : index
    %37 = vector.load %arg10[%c16, %c0_16] : memref<400x256xbf16, #tpu.memory_space<vmem>>, vector<16x256xbf16>
    tpu.vector_store %arg10[%c16, %c0_16], %36 {strides = array<i32>} : memref<400x256xbf16, #tpu.memory_space<vmem>>, vector<16x256xbf16>,
    %c0_17 = arith.constant 0 : index
    %c2 = arith.constant 2 : index
    %38 = vector.load %arg9[%c0_17, %c2] : memref<16x324xbf16, #tpu.memory_space<vmem>>, vector<16x256xbf16>
    %c32 = arith.constant 32 : index
    %c0_18 = arith.constant 0 : index
    %39 = vector.load %arg10[%c32, %c0_18] : memref<400x256xbf16, #tpu.memory_space<vmem>>, vector<16x256xbf16>
    tpu.vector_store %arg10[%c32, %c0_18], %38 {strides = array<i32>} : memref<400x256xbf16, #tpu.memory_space<vmem>>, vector<16x256xbf16>,
    %c0_19 = arith.constant 0 : index
    %c3 = arith.constant 3 : index
    %40 = vector.load %arg9[%c0_19, %c3] : memref<16x324xbf16, #tpu.memory_space<vmem>>, vector<16x256xbf16>
    %c15_i32 = arith.constant 15 : i32
    %41 = vector.broadcast %c15_i32 : i32 to vector<1x256xi32>
    %42 = arith.cmpi slt, %21, %41 : vector<1x256xi32>
    %cst_20 = arith.constant 0.000000e+00 : bf16
    %43 = vector.broadcast %cst_20 : bf16 to vector<16x256xbf16>
    %44 = vector.shape_cast %42 : vector<1x256xi1> to vector<1x256xi1>
    %45 = vector.broadcast %44 : vector<1x256xi1> to vector<16x256xi1>
    %46 = arith.select %45, %40, %43 : vector<16x256xi1>, vector<16x256xbf16>
    %c48 = arith.constant 48 : index
    %c0_21 = arith.constant 0 : index
    %47 = vector.load %arg10[%c48, %c0_21] : memref<400x256xbf16, #tpu.memory_space<vmem>>, vector<16x256xbf16>
    tpu.vector_store %arg10[%c48, %c0_21], %46 {strides = array<i32>} : memref<400x256xbf16, #tpu.memory_space<vmem>>, vector<16x256xbf16>,
    %c0_22 = arith.constant 0 : index
    %c4 = arith.constant 4 : index
    %48 = vector.load %arg9[%c0_22, %c4] : memref<16x324xbf16, #tpu.memory_space<vmem>>, vector<16x256xbf16>
    %c14_i32 = arith.constant 14 : i32
    %49 = vector.broadcast %c14_i32 : i32 to vector<1x256xi32>
    %50 = arith.cmpi slt, %21, %49 : vector<1x256xi32>
    %cst_23 = arith.constant 0.000000e+00 : bf16
    %51 = vector.broadcast %cst_23 : bf16 to vector<16x256xbf16>
    %52 = vector.shape_cast %50 : vector<1x256xi1> to vector<1x256xi1>
    %53 = vector.broadcast %52 : vector<1x256xi1> to vector<16x256xi1>
    %54 = arith.select %53, %48, %51 : vector<16x256xi1>, vector<16x256xbf16>
    %c64 = arith.constant 64 : index
    %c0_24 = arith.constant 0 : index
    %55 = vector.load %arg10[%c64, %c0_24] : memref<400x256xbf16, #tpu.memory_space<vmem>>, vector<16x256xbf16>
    tpu.vector_store %arg10[%c64, %c0_24], %54 {strides = array<i32>} : memref<400x256xbf16, #tpu.memory_space<vmem>>, vector<16x256xbf16>,
    %c0_25 = arith.constant 0 : index
    %c16_26 = arith.constant 16 : index
    %56 = vector.load %arg9[%c0_25, %c16_26] : memref<16x324xbf16, #tpu.memory_space<vmem>>, vector<16x256xbf16>
    %c2_i32_27 = arith.constant 2 : i32
    %57 = vector.broadcast %c2_i32_27 : i32 to vector<1x256xi32>
    %58 = arith.cmpi sge, %21, %57 : vector<1x256xi32>
    %cst_28 = arith.constant 0.000000e+00 : bf16
    %59 = vector.broadcast %cst_28 : bf16 to vector<16x256xbf16>
    %60 = vector.shape_cast %58 : vector<1x256xi1> to vector<1x256xi1>
    %61 = vector.broadcast %60 : vector<1x256xi1> to vector<16x256xi1>
    %62 = arith.select %61, %56, %59 : vector<16x256xi1>, vector<16x256xbf16>
    %c80 = arith.constant 80 : index
    %c0_29 = arith.constant 0 : index
    %63 = vector.load %arg10[%c80, %c0_29] : memref<400x256xbf16, #tpu.memory_space<vmem>>, vector<16x256xbf16>
    tpu.vector_store %arg10[%c80, %c0_29], %62 {strides = array<i32>} : memref<400x256xbf16, #tpu.memory_space<vmem>>, vector<16x256xbf16>,
    %c0_30 = arith.constant 0 : index
    %c17 = arith.constant 17 : index
    %64 = vector.load %arg9[%c0_30, %c17] : memref<16x324xbf16, #tpu.memory_space<vmem>>, vector<16x256xbf16>
    %c1_i32_31 = arith.constant 1 : i32
    %65 = vector.broadcast %c1_i32_31 : i32 to vector<1x256xi32>
    %66 = arith.cmpi sge, %21, %65 : vector<1x256xi32>
    %cst_32 = arith.constant 0.000000e+00 : bf16
    %67 = vector.broadcast %cst_32 : bf16 to vector<16x256xbf16>
    %68 = vector.shape_cast %66 : vector<1x256xi1> to vector<1x256xi1>
    %69 = vector.broadcast %68 : vector<1x256xi1> to vector<16x256xi1>
    %70 = arith.select %69, %64, %67 : vector<16x256xi1>, vector<16x256xbf16>
    %c96 = arith.constant 96 : index
    %c0_33 = arith.constant 0 : index
    %71 = vector.load %arg10[%c96, %c0_33] : memref<400x256xbf16, #tpu.memory_space<vmem>>, vector<16x256xbf16>
    tpu.vector_store %arg10[%c96, %c0_33], %70 {strides = array<i32>} : memref<400x256xbf16, #tpu.memory_space<vmem>>, vector<16x256xbf16>,
    %c0_34 = arith.constant 0 : index
    %c18 = arith.constant 18 : index
    %72 = vector.load %arg9[%c0_34, %c18] : memref<16x324xbf16, #tpu.memory_space<vmem>>, vector<16x256xbf16>
    %c112 = arith.constant 112 : index
    %c0_35 = arith.constant 0 : index
    %73 = vector.load %arg10[%c112, %c0_35] : memref<400x256xbf16, #tpu.memory_space<vmem>>, vector<16x256xbf16>
    tpu.vector_store %arg10[%c112, %c0_35], %72 {strides = array<i32>} : memref<400x256xbf16, #tpu.memory_space<vmem>>, vector<16x256xbf16>,
    %c0_36 = arith.constant 0 : index
    %c19 = arith.constant 19 : index
    %74 = vector.load %arg9[%c0_36, %c19] : memref<16x324xbf16, #tpu.memory_space<vmem>>, vector<16x256xbf16>
    %c15_i32_37 = arith.constant 15 : i32
    %75 = vector.broadcast %c15_i32_37 : i32 to vector<1x256xi32>
    %76 = arith.cmpi slt, %21, %75 : vector<1x256xi32>
    %cst_38 = arith.constant 0.000000e+00 : bf16
    %77 = vector.broadcast %cst_38 : bf16 to vector<16x256xbf16>
    %78 = vector.shape_cast %76 : vector<1x256xi1> to vector<1x256xi1>
    %79 = vector.broadcast %78 : vector<1x256xi1> to vector<16x256xi1>
    %80 = arith.select %79, %74, %77 : vector<16x256xi1>, vector<16x256xbf16>
    %c128 = arith.constant 128 : index
    %c0_39 = arith.constant 0 : index
    %81 = vector.load %arg10[%c128, %c0_39] : memref<400x256xbf16, #tpu.memory_space<vmem>>, vector<16x256xbf16>
    tpu.vector_store %arg10[%c128, %c0_39], %80 {strides = array<i32>} : memref<400x256xbf16, #tpu.memory_space<vmem>>, vector<16x256xbf16>,
    %c0_40 = arith.constant 0 : index
    %c20 = arith.constant 20 : index
    %82 = vector.load %arg9[%c0_40, %c20] : memref<16x324xbf16, #tpu.memory_space<vmem>>, vector<16x256xbf16>
    %c14_i32_41 = arith.constant 14 : i32
    %83 = vector.broadcast %c14_i32_41 : i32 to vector<1x256xi32>
    %84 = arith.cmpi slt, %21, %83 : vector<1x256xi32>
    %cst_42 = arith.constant 0.000000e+00 : bf16
    %85 = vector.broadcast %cst_42 : bf16 to vector<16x256xbf16>
    %86 = vector.shape_cast %84 : vector<1x256xi1> to vector<1x256xi1>
    %87 = vector.broadcast %86 : vector<1x256xi1> to vector<16x256xi1>
    %88 = arith.select %87, %82, %85 : vector<16x256xi1>, vector<16x256xbf16>
    %c144 = arith.constant 144 : index
    %c0_43 = arith.constant 0 : index
    %89 = vector.load %arg10[%c144, %c0_43] : memref<400x256xbf16, #tpu.memory_space<vmem>>, vector<16x256xbf16>
    tpu.vector_store %arg10[%c144, %c0_43], %88 {strides = array<i32>} : memref<400x256xbf16, #tpu.memory_space<vmem>>, vector<16x256xbf16>,
    %c0_44 = arith.constant 0 : index
    %c32_45 = arith.constant 32 : index
    %90 = vector.load %arg9[%c0_44, %c32_45] : memref<16x324xbf16, #tpu.memory_space<vmem>>, vector<16x256xbf16>
    %c2_i32_46 = arith.constant 2 : i32
    %91 = vector.broadcast %c2_i32_46 : i32 to vector<1x256xi32>
    %92 = arith.cmpi sge, %21, %91 : vector<1x256xi32>
    %cst_47 = arith.constant 0.000000e+00 : bf16
    %93 = vector.broadcast %cst_47 : bf16 to vector<16x256xbf16>
    %94 = vector.shape_cast %92 : vector<1x256xi1> to vector<1x256xi1>
    %95 = vector.broadcast %94 : vector<1x256xi1> to vector<16x256xi1>
    %96 = arith.select %95, %90, %93 : vector<16x256xi1>, vector<16x256xbf16>
    %c160 = arith.constant 160 : index
    %c0_48 = arith.constant 0 : index
    %97 = vector.load %arg10[%c160, %c0_48] : memref<400x256xbf16, #tpu.memory_space<vmem>>, vector<16x256xbf16>
    tpu.vector_store %arg10[%c160, %c0_48], %96 {strides = array<i32>} : memref<400x256xbf16, #tpu.memory_space<vmem>>, vector<16x256xbf16>,
    %c0_49 = arith.constant 0 : index
    %c33 = arith.constant 33 : index
    %98 = vector.load %arg9[%c0_49, %c33] : memref<16x324xbf16, #tpu.memory_space<vmem>>, vector<16x256xbf16>
    %c1_i32_50 = arith.constant 1 : i32
    %99 = vector.broadcast %c1_i32_50 : i32 to vector<1x256xi32>
    %100 = arith.cmpi sge, %21, %99 : vector<1x256xi32>
    %cst_51 = arith.constant 0.000000e+00 : bf16
    %101 = vector.broadcast %cst_51 : bf16 to vector<16x256xbf16>
    %102 = vector.shape_cast %100 : vector<1x256xi1> to vector<1x256xi1>
    %103 = vector.broadcast %102 : vector<1x256xi1> to vector<16x256xi1>
    %104 = arith.select %103, %98, %101 : vector<16x256xi1>, vector<16x256xbf16>
    %c176 = arith.constant 176 : index
    %c0_52 = arith.constant 0 : index
    %105 = vector.load %arg10[%c176, %c0_52] : memref<400x256xbf16, #tpu.memory_space<vmem>>, vector<16x256xbf16>
    tpu.vector_store %arg10[%c176, %c0_52], %104 {strides = array<i32>} : memref<400x256xbf16, #tpu.memory_space<vmem>>, vector<16x256xbf16>,
    %c0_53 = arith.constant 0 : index
    %c34_54 = arith.constant 34 : index
    %106 = vector.load %arg9[%c0_53, %c34_54] : memref<16x324xbf16, #tpu.memory_space<vmem>>, vector<16x256xbf16>
    %c192 = arith.constant 192 : index
    %c0_55 = arith.constant 0 : index
    %107 = vector.load %arg10[%c192, %c0_55] : memref<400x256xbf16, #tpu.memory_space<vmem>>, vector<16x256xbf16>
    tpu.vector_store %arg10[%c192, %c0_55], %106 {strides = array<i32>} : memref<400x256xbf16, #tpu.memory_space<vmem>>, vector<16x256xbf16>,
    %c0_56 = arith.constant 0 : index
    %c35 = arith.constant 35 : index
    %108 = vector.load %arg9[%c0_56, %c35] : memref<16x324xbf16, #tpu.memory_space<vmem>>, vector<16x256xbf16>
    %c15_i32_57 = arith.constant 15 : i32
    %109 = vector.broadcast %c15_i32_57 : i32 to vector<1x256xi32>
    %110 = arith.cmpi slt, %21, %109 : vector<1x256xi32>
    %cst_58 = arith.constant 0.000000e+00 : bf16
    %111 = vector.broadcast %cst_58 : bf16 to vector<16x256xbf16>
    %112 = vector.shape_cast %110 : vector<1x256xi1> to vector<1x256xi1>
    %113 = vector.broadcast %112 : vector<1x256xi1> to vector<16x256xi1>
    %114 = arith.select %113, %108, %111 : vector<16x256xi1>, vector<16x256xbf16>
    %c208 = arith.constant 208 : index
    %c0_59 = arith.constant 0 : index
    %115 = vector.load %arg10[%c208, %c0_59] : memref<400x256xbf16, #tpu.memory_space<vmem>>, vector<16x256xbf16>
    tpu.vector_store %arg10[%c208, %c0_59], %114 {strides = array<i32>} : memref<400x256xbf16, #tpu.memory_space<vmem>>, vector<16x256xbf16>,
    %c0_60 = arith.constant 0 : index
    %c36 = arith.constant 36 : index
    %116 = vector.load %arg9[%c0_60, %c36] : memref<16x324xbf16, #tpu.memory_space<vmem>>, vector<16x256xbf16>
    %c14_i32_61 = arith.constant 14 : i32
    %117 = vector.broadcast %c14_i32_61 : i32 to vector<1x256xi32>
    %118 = arith.cmpi slt, %21, %117 : vector<1x256xi32>
    %cst_62 = arith.constant 0.000000e+00 : bf16
    %119 = vector.broadcast %cst_62 : bf16 to vector<16x256xbf16>
    %120 = vector.shape_cast %118 : vector<1x256xi1> to vector<1x256xi1>
    %121 = vector.broadcast %120 : vector<1x256xi1> to vector<16x256xi1>
    %122 = arith.select %121, %116, %119 : vector<16x256xi1>, vector<16x256xbf16>
    %c224 = arith.constant 224 : index
    %c0_63 = arith.constant 0 : index
    %123 = vector.load %arg10[%c224, %c0_63] : memref<400x256xbf16, #tpu.memory_space<vmem>>, vector<16x256xbf16>
    tpu.vector_store %arg10[%c224, %c0_63], %122 {strides = array<i32>} : memref<400x256xbf16, #tpu.memory_space<vmem>>, vector<16x256xbf16>,
    %c0_64 = arith.constant 0 : index
    %c48_65 = arith.constant 48 : index
    %124 = vector.load %arg9[%c0_64, %c48_65] : memref<16x324xbf16, #tpu.memory_space<vmem>>, vector<16x256xbf16>
    %c2_i32_66 = arith.constant 2 : i32
    %125 = vector.broadcast %c2_i32_66 : i32 to vector<1x256xi32>
    %126 = arith.cmpi sge, %21, %125 : vector<1x256xi32>
    %cst_67 = arith.constant 0.000000e+00 : bf16
    %127 = vector.broadcast %cst_67 : bf16 to vector<16x256xbf16>
    %128 = vector.shape_cast %126 : vector<1x256xi1> to vector<1x256xi1>
    %129 = vector.broadcast %128 : vector<1x256xi1> to vector<16x256xi1>
    %130 = arith.select %129, %124, %127 : vector<16x256xi1>, vector<16x256xbf16>
    %c240 = arith.constant 240 : index
    %c0_68 = arith.constant 0 : index
    %131 = vector.load %arg10[%c240, %c0_68] : memref<400x256xbf16, #tpu.memory_space<vmem>>, vector<16x256xbf16>
    tpu.vector_store %arg10[%c240, %c0_68], %130 {strides = array<i32>} : memref<400x256xbf16, #tpu.memory_space<vmem>>, vector<16x256xbf16>,
    %c0_69 = arith.constant 0 : index
    %c49 = arith.constant 49 : index
    %132 = vector.load %arg9[%c0_69, %c49] : memref<16x324xbf16, #tpu.memory_space<vmem>>, vector<16x256xbf16>
    %c1_i32_70 = arith.constant 1 : i32
    %133 = vector.broadcast %c1_i32_70 : i32 to vector<1x256xi32>
    %134 = arith.cmpi sge, %21, %133 : vector<1x256xi32>
    %cst_71 = arith.constant 0.000000e+00 : bf16
    %135 = vector.broadcast %cst_71 : bf16 to vector<16x256xbf16>
    %136 = vector.shape_cast %134 : vector<1x256xi1> to vector<1x256xi1>
    %137 = vector.broadcast %136 : vector<1x256xi1> to vector<16x256xi1>
    %138 = arith.select %137, %132, %135 : vector<16x256xi1>, vector<16x256xbf16>
    %c256 = arith.constant 256 : index
    %c0_72 = arith.constant 0 : index
    %139 = vector.load %arg10[%c256, %c0_72] : memref<400x256xbf16, #tpu.memory_space<vmem>>, vector<16x256xbf16>
    tpu.vector_store %arg10[%c256, %c0_72], %138 {strides = array<i32>} : memref<400x256xbf16, #tpu.memory_space<vmem>>, vector<16x256xbf16>,
    %c0_73 = arith.constant 0 : index
    %c50 = arith.constant 50 : index
    %140 = vector.load %arg9[%c0_73, %c50] : memref<16x324xbf16, #tpu.memory_space<vmem>>, vector<16x256xbf16>
    %c272 = arith.constant 272 : index
    %c0_74 = arith.constant 0 : index
    %141 = vector.load %arg10[%c272, %c0_74] : memref<400x256xbf16, #tpu.memory_space<vmem>>, vector<16x256xbf16>
    tpu.vector_store %arg10[%c272, %c0_74], %140 {strides = array<i32>} : memref<400x256xbf16, #tpu.memory_space<vmem>>, vector<16x256xbf16>,
    %c0_75 = arith.constant 0 : index
    %c51 = arith.constant 51 : index
    %142 = vector.load %arg9[%c0_75, %c51] : memref<16x324xbf16, #tpu.memory_space<vmem>>, vector<16x256xbf16>
    %c15_i32_76 = arith.constant 15 : i32
    %143 = vector.broadcast %c15_i32_76 : i32 to vector<1x256xi32>
    %144 = arith.cmpi slt, %21, %143 : vector<1x256xi32>
    %cst_77 = arith.constant 0.000000e+00 : bf16
    %145 = vector.broadcast %cst_77 : bf16 to vector<16x256xbf16>
    %146 = vector.shape_cast %144 : vector<1x256xi1> to vector<1x256xi1>
    %147 = vector.broadcast %146 : vector<1x256xi1> to vector<16x256xi1>
    %148 = arith.select %147, %142, %145 : vector<16x256xi1>, vector<16x256xbf16>
    %c288 = arith.constant 288 : index
    %c0_78 = arith.constant 0 : index
    %149 = vector.load %arg10[%c288, %c0_78] : memref<400x256xbf16, #tpu.memory_space<vmem>>, vector<16x256xbf16>
    tpu.vector_store %arg10[%c288, %c0_78], %148 {strides = array<i32>} : memref<400x256xbf16, #tpu.memory_space<vmem>>, vector<16x256xbf16>,
    %c0_79 = arith.constant 0 : index
    %c52 = arith.constant 52 : index
    %150 = vector.load %arg9[%c0_79, %c52] : memref<16x324xbf16, #tpu.memory_space<vmem>>, vector<16x256xbf16>
    %c14_i32_80 = arith.constant 14 : i32
    %151 = vector.broadcast %c14_i32_80 : i32 to vector<1x256xi32>
    %152 = arith.cmpi slt, %21, %151 : vector<1x256xi32>
    %cst_81 = arith.constant 0.000000e+00 : bf16
    %153 = vector.broadcast %cst_81 : bf16 to vector<16x256xbf16>
    %154 = vector.shape_cast %152 : vector<1x256xi1> to vector<1x256xi1>
    %155 = vector.broadcast %154 : vector<1x256xi1> to vector<16x256xi1>
    %156 = arith.select %155, %150, %153 : vector<16x256xi1>, vector<16x256xbf16>
    %c304 = arith.constant 304 : index
    %c0_82 = arith.constant 0 : index
    %157 = vector.load %arg10[%c304, %c0_82] : memref<400x256xbf16, #tpu.memory_space<vmem>>, vector<16x256xbf16>
    tpu.vector_store %arg10[%c304, %c0_82], %156 {strides = array<i32>} : memref<400x256xbf16, #tpu.memory_space<vmem>>, vector<16x256xbf16>,
    %c0_83 = arith.constant 0 : index
    %c64_84 = arith.constant 64 : index
    %158 = vector.load %arg9[%c0_83, %c64_84] : memref<16x324xbf16, #tpu.memory_space<vmem>>, vector<16x256xbf16>
    %c2_i32_85 = arith.constant 2 : i32
    %159 = vector.broadcast %c2_i32_85 : i32 to vector<1x256xi32>
    %160 = arith.cmpi sge, %21, %159 : vector<1x256xi32>
    %cst_86 = arith.constant 0.000000e+00 : bf16
    %161 = vector.broadcast %cst_86 : bf16 to vector<16x256xbf16>
    %162 = vector.shape_cast %160 : vector<1x256xi1> to vector<1x256xi1>
    %163 = vector.broadcast %162 : vector<1x256xi1> to vector<16x256xi1>
    %164 = arith.select %163, %158, %161 : vector<16x256xi1>, vector<16x256xbf16>
    %c320 = arith.constant 320 : index
    %c0_87 = arith.constant 0 : index
    %165 = vector.load %arg10[%c320, %c0_87] : memref<400x256xbf16, #tpu.memory_space<vmem>>, vector<16x256xbf16>
    tpu.vector_store %arg10[%c320, %c0_87], %164 {strides = array<i32>} : memref<400x256xbf16, #tpu.memory_space<vmem>>, vector<16x256xbf16>,
    %c0_88 = arith.constant 0 : index
    %c65 = arith.constant 65 : index
    %166 = vector.load %arg9[%c0_88, %c65] : memref<16x324xbf16, #tpu.memory_space<vmem>>, vector<16x256xbf16>
    %c1_i32_89 = arith.constant 1 : i32
    %167 = vector.broadcast %c1_i32_89 : i32 to vector<1x256xi32>
    %168 = arith.cmpi sge, %21, %167 : vector<1x256xi32>
    %cst_90 = arith.constant 0.000000e+00 : bf16
    %169 = vector.broadcast %cst_90 : bf16 to vector<16x256xbf16>
    %170 = vector.shape_cast %168 : vector<1x256xi1> to vector<1x256xi1>
    %171 = vector.broadcast %170 : vector<1x256xi1> to vector<16x256xi1>
    %172 = arith.select %171, %166, %169 : vector<16x256xi1>, vector<16x256xbf16>
    %c336 = arith.constant 336 : index
    %c0_91 = arith.constant 0 : index
    %173 = vector.load %arg10[%c336, %c0_91] : memref<400x256xbf16, #tpu.memory_space<vmem>>, vector<16x256xbf16>
    tpu.vector_store %arg10[%c336, %c0_91], %172 {strides = array<i32>} : memref<400x256xbf16, #tpu.memory_space<vmem>>, vector<16x256xbf16>,
    %c0_92 = arith.constant 0 : index
    %c66 = arith.constant 66 : index
    %174 = vector.load %arg9[%c0_92, %c66] : memref<16x324xbf16, #tpu.memory_space<vmem>>, vector<16x256xbf16>
    %c352 = arith.constant 352 : index
    %c0_93 = arith.constant 0 : index
    %175 = vector.load %arg10[%c352, %c0_93] : memref<400x256xbf16, #tpu.memory_space<vmem>>, vector<16x256xbf16>
    tpu.vector_store %arg10[%c352, %c0_93], %174 {strides = array<i32>} : memref<400x256xbf16, #tpu.memory_space<vmem>>, vector<16x256xbf16>,
    %c0_94 = arith.constant 0 : index
    %c67 = arith.constant 67 : index
    %176 = vector.load %arg9[%c0_94, %c67] : memref<16x324xbf16, #tpu.memory_space<vmem>>, vector<16x256xbf16>
    %c15_i32_95 = arith.constant 15 : i32
    %177 = vector.broadcast %c15_i32_95 : i32 to vector<1x256xi32>
    %178 = arith.cmpi slt, %21, %177 : vector<1x256xi32>
    %cst_96 = arith.constant 0.000000e+00 : bf16
    %179 = vector.broadcast %cst_96 : bf16 to vector<16x256xbf16>
    %180 = vector.shape_cast %178 : vector<1x256xi1> to vector<1x256xi1>
    %181 = vector.broadcast %180 : vector<1x256xi1> to vector<16x256xi1>
    %182 = arith.select %181, %176, %179 : vector<16x256xi1>, vector<16x256xbf16>
    %c368 = arith.constant 368 : index
    %c0_97 = arith.constant 0 : index
    %183 = vector.load %arg10[%c368, %c0_97] : memref<400x256xbf16, #tpu.memory_space<vmem>>, vector<16x256xbf16>
    tpu.vector_store %arg10[%c368, %c0_97], %182 {strides = array<i32>} : memref<400x256xbf16, #tpu.memory_space<vmem>>, vector<16x256xbf16>,
    %c0_98 = arith.constant 0 : index
    %c68 = arith.constant 68 : index
    %184 = vector.load %arg9[%c0_98, %c68] : memref<16x324xbf16, #tpu.memory_space<vmem>>, vector<16x256xbf16>
    %c14_i32_99 = arith.constant 14 : i32
    %185 = vector.broadcast %c14_i32_99 : i32 to vector<1x256xi32>
    %186 = arith.cmpi slt, %21, %185 : vector<1x256xi32>
    %cst_100 = arith.constant 0.000000e+00 : bf16
    %187 = vector.broadcast %cst_100 : bf16 to vector<16x256xbf16>
    %188 = vector.shape_cast %186 : vector<1x256xi1> to vector<1x256xi1>
    %189 = vector.broadcast %188 : vector<1x256xi1> to vector<16x256xi1>
    %190 = arith.select %189, %184, %187 : vector<16x256xi1>, vector<16x256xbf16>
    %c384 = arith.constant 384 : index
    %c0_101 = arith.constant 0 : index
    %191 = vector.load %arg10[%c384, %c0_101] : memref<400x256xbf16, #tpu.memory_space<vmem>>, vector<16x256xbf16>
    tpu.vector_store %arg10[%c384, %c0_101], %190 {strides = array<i32>} : memref<400x256xbf16, #tpu.memory_space<vmem>>, vector<16x256xbf16>,
    %c0_102 = arith.constant 0 : index
    %c0_103 = arith.constant 0 : index
    %192 = vector.load %arg2[%c0_102, %c0_103] : memref<16x400xbf16, #tpu.memory_space<vmem>>, vector<16x400xbf16>
    %c0_104 = arith.constant 0 : index
    %c0_105 = arith.constant 0 : index
    %193 = vector.load %arg10[%c0_104, %c0_105] : memref<400x256xbf16, #tpu.memory_space<vmem>>, vector<400x256xbf16>
    %cst_106 = arith.constant dense<0.000000e+00> : vector<16x256xf32>
    %194 = tpu.matmul %192, %193, %cst_106 {dimension_numbers = #tpu.dot_dimension_numbers<[1], [0], [0], [1], [0, 0, 1, 1], [], []>} : vector<16x400xbf16>, vector<400x256xbf16>, vector<16x256xf32> -> vector<16x256xf32>
    %c0_107 = arith.constant 0 : index
    %c0_108 = arith.constant 0 : index
    %195 = vector.load %arg3[%c0_107, %c0_108] : memref<16x1xf32, #tpu.memory_space<vmem>>, vector<16x1xf32>
    %196 = vector.broadcast %195 : vector<16x1xf32> to vector<16x256xf32>
    %197 = arith.addf %194, %196 : vector<16x256xf32>
    %198 = vector.extract_strided_slice %197 {offsets = [0, 0], sizes = [8, 256], strides = [1, 1]} : vector<16x256xf32> to vector<8x256xf32>
    %cst_109 = arith.constant dense<0.000000e+00> : vector<8xf32>
    %199 = vector.multi_reduction <add>, %198, %cst_109 [1] : vector<8x256xf32> to vector<8xf32>
    %200 = vector.shape_cast %199 : vector<8xf32> to vector<8x1xf32>
    %cst_110 = arith.constant 3.906250e-03 : f32
    %201 = vector.broadcast %cst_110 : f32 to vector<8x1xf32>
    %202 = arith.mulf %200, %201 : vector<8x1xf32>
    %c0_111 = arith.constant 0 : index
    %c0_112 = arith.constant 0 : index
    %203 = vector.load %arg4[%c0_111, %c0_112] : memref<2x8xf32, #tpu.memory_space<vmem>>, vector<2x8xf32>
    %cst_113 = arith.constant dense<0.000000e+00> : vector<2x1xf32>
    %204 = tpu.matmul %203, %202, %cst_113 {dimension_numbers = #tpu.dot_dimension_numbers<[1], [0], [0], [1], [0, 0, 1, 1], [], []>} : vector<2x8xf32>, vector<8x1xf32>, vector<2x1xf32> -> vector<2x1xf32>
    %cst_114 = arith.constant 0.000000e+00 : f32
    %205 = vector.broadcast %cst_114 : f32 to vector<2x1xf32>
    %206 = arith.maximumf %204, %205 : vector<2x1xf32>
    %c0_115 = arith.constant 0 : index
    %c0_116 = arith.constant 0 : index
    %207 = vector.load %arg5[%c0_115, %c0_116] : memref<8x2xf32, #tpu.memory_space<vmem>>, vector<8x2xf32>
    %cst_117 = arith.constant dense<0.000000e+00> : vector<8x1xf32>
    %208 = tpu.matmul %207, %206, %cst_117 {dimension_numbers = #tpu.dot_dimension_numbers<[1], [0], [0], [1], [0, 0, 1, 1], [], []>} : vector<8x2xf32>, vector<2x1xf32>, vector<8x1xf32> -> vector<8x1xf32>
    %209 = arith.negf %208 : vector<8x1xf32>
    %210 = math.exp %209 : vector<8x1xf32>
    %cst_118 = arith.constant 1.000000e+00 : f32
    %211 = vector.broadcast %cst_118 : f32 to vector<8x1xf32>
    %212 = arith.addf %211, %210 : vector<8x1xf32>
    %213 = arith.divf %211, %212 : vector<8x1xf32>
    %214 = vector.broadcast %213 : vector<8x1xf32> to vector<8x256xf32>
    %215 = arith.mulf %198, %214 : vector<8x256xf32>
    %c0_119 = arith.constant 0 : index
    %c0_120 = arith.constant 0 : index
    %c0_121 = arith.constant 0 : index
    %216 = vector.load %arg8[%c0_119, %c0_120, %c0_121] : memref<1x16x256xf32, #tpu.memory_space<vmem>>, vector<1x8x256xf32>
    %217 = vector.shape_cast %216 : vector<1x8x256xf32> to vector<8x256xf32>
    %218 = vector.shape_cast %215 : vector<8x256xf32> to vector<1x8x256xf32>
    tpu.vector_store %arg8[%c0_119, %c0_120, %c0_121], %218 {strides = array<i32>} : memref<1x16x256xf32, #tpu.memory_space<vmem>>, vector<1x8x256xf32>,
    %219 = vector.extract_strided_slice %197 {offsets = [8, 0], sizes = [8, 256], strides = [1, 1]} : vector<16x256xf32> to vector<8x256xf32>
    %cst_122 = arith.constant dense<0.000000e+00> : vector<8xf32>
    %220 = vector.multi_reduction <add>, %219, %cst_122 [1] : vector<8x256xf32> to vector<8xf32>
    %221 = vector.shape_cast %220 : vector<8xf32> to vector<8x1xf32>
    %cst_123 = arith.constant 3.906250e-03 : f32
    %222 = vector.broadcast %cst_123 : f32 to vector<8x1xf32>
    %223 = arith.mulf %221, %222 : vector<8x1xf32>
    %c0_124 = arith.constant 0 : index
    %c0_125 = arith.constant 0 : index
    %224 = vector.load %arg6[%c0_124, %c0_125] : memref<2x8xf32, #tpu.memory_space<vmem>>, vector<2x8xf32>
    %cst_126 = arith.constant dense<0.000000e+00> : vector<2x1xf32>
    %225 = tpu.matmul %224, %223, %cst_126 {dimension_numbers = #tpu.dot_dimension_numbers<[1], [0], [0], [1], [0, 0, 1, 1], [], []>} : vector<2x8xf32>, vector<8x1xf32>, vector<2x1xf32> -> vector<2x1xf32>
    %cst_127 = arith.constant 0.000000e+00 : f32
    %226 = vector.broadcast %cst_127 : f32 to vector<2x1xf32>
    %227 = arith.maximumf %225, %226 : vector<2x1xf32>
    %c0_128 = arith.constant 0 : index
    %c0_129 = arith.constant 0 : index
    %228 = vector.load %arg7[%c0_128, %c0_129] : memref<8x2xf32, #tpu.memory_space<vmem>>, vector<8x2xf32>
    %cst_130 = arith.constant dense<0.000000e+00> : vector<8x1xf32>
    %229 = tpu.matmul %228, %227, %cst_130 {dimension_numbers = #tpu.dot_dimension_numbers<[1], [0], [0], [1], [0, 0, 1, 1], [], []>} : vector<8x2xf32>, vector<2x1xf32>, vector<8x1xf32> -> vector<8x1xf32>
    %230 = arith.negf %229 : vector<8x1xf32>
    %231 = math.exp %230 : vector<8x1xf32>
    %cst_131 = arith.constant 1.000000e+00 : f32
    %232 = vector.broadcast %cst_131 : f32 to vector<8x1xf32>
    %233 = arith.addf %232, %231 : vector<8x1xf32>
    %234 = arith.divf %232, %233 : vector<8x1xf32>
    %235 = vector.broadcast %234 : vector<8x1xf32> to vector<8x256xf32>
    %236 = arith.mulf %219, %235 : vector<8x256xf32>
    %c0_132 = arith.constant 0 : index
    %c8 = arith.constant 8 : index
    %c0_133 = arith.constant 0 : index
    %237 = vector.load %arg8[%c0_132, %c8, %c0_133] : memref<1x16x256xf32, #tpu.memory_space<vmem>>, vector<1x8x256xf32>
    %238 = vector.shape_cast %237 : vector<1x8x256xf32> to vector<8x256xf32>
    %239 = vector.shape_cast %236 : vector<8x256xf32> to vector<1x8x256xf32>
    tpu.vector_store %arg8[%c0_132, %c8, %c0_133], %239 {strides = array<i32>} : memref<1x16x256xf32, #tpu.memory_space<vmem>>, vector<1x8x256xf32>,
    return
  }
  func.func @transform_0(%arg0: i32) -> (i32, i32, i32) {
    %c0_i32 = arith.constant 0 : i32
    %c0_i32_0 = arith.constant 0 : i32
    %c0_i32_1 = arith.constant 0 : i32
    return %arg0, %c0_i32, %c0_i32_0 : i32, i32, i32
  }
  func.func @transform_1(%arg0: i32) -> (i32, i32) {
    %c0_i32 = arith.constant 0 : i32
    %c0_i32_0 = arith.constant 0 : i32
    %c0_i32_1 = arith.constant 0 : i32
    return %c0_i32, %c0_i32_0 : i32, i32
  }
  func.func @transform_2(%arg0: i32) -> (i32, i32) {
    %c0_i32 = arith.constant 0 : i32
    %c0_i32_0 = arith.constant 0 : i32
    %c0_i32_1 = arith.constant 0 : i32
    return %c0_i32, %c0_i32_0 : i32, i32
  }
  func.func @transform_3(%arg0: i32) -> (i32, i32) {
    %c0_i32 = arith.constant 0 : i32
    %c0_i32_0 = arith.constant 0 : i32
    %c0_i32_1 = arith.constant 0 : i32
    return %c0_i32, %c0_i32_0 : i32, i32
  }
  func.func @transform_4(%arg0: i32) -> (i32, i32) {
    %c0_i32 = arith.constant 0 : i32
    %c0_i32_0 = arith.constant 0 : i32
    %c0_i32_1 = arith.constant 0 : i32
    return %c0_i32, %c0_i32_0 : i32, i32
  }
  func.func @transform_5(%arg0: i32) -> (i32, i32) {
    %c0_i32 = arith.constant 0 : i32
    %c0_i32_0 = arith.constant 0 : i32
    %c0_i32_1 = arith.constant 0 : i32
    return %c0_i32, %c0_i32_0 : i32, i32
  }
  func.func @transform_6(%arg0: i32) -> (i32, i32) {
    %c0_i32 = arith.constant 0 : i32
    %c0_i32_0 = arith.constant 0 : i32
    %c0_i32_1 = arith.constant 0 : i32
    return %c0_i32, %c0_i32_0 : i32, i32
  }
  func.func @transform_7(%arg0: i32) -> (i32, i32, i32) {
    %c0_i32 = arith.constant 0 : i32
    %c0_i32_0 = arith.constant 0 : i32
    %c0_i32_1 = arith.constant 0 : i32
    return %arg0, %c0_i32, %c0_i32_0 : i32, i32, i32
  }
}

</mosaic_0001>

<bundles_post_ra>
// kernel: tpu_custom_call.1
= control target key start
LH: loop header
LB: loop body
LE: loop exit
PB: predicated region body
PF: predicated region fallthrough
CT: control target
= control target key end

     0   :  { %12 = vsyncpa [#allocation5], 0  ;;  %s2470_s0 = inlined_call_operand.vmem [shape: bf16[2,16,256], index: 0, kind: input, shape index: {}]   ;;  %s2471_s1 = inlined_call_operand.hbm [shape: bf16[16,400], index: 1, kind: input, shape index: {}]   ;;  %s2472_s2 = inlined_call_operand.vmem [shape: f32[16,1], index: 2, kind: input, shape index: {}]   ;;  %s2473_s3 = inlined_call_operand.vmem [shape: f32[2,8], index: 3, kind: input, shape index: {}]   ;;  %s2474_s4 = inlined_call_operand.vmem [shape: f32[8,2], index: 4, kind: input, shape index: {}]   ;;  %s2475_s5 = inlined_call_operand.vmem [shape: f32[2,8], index: 5, kind: input, shape index: {}]   ;;  %s2476_s6 = inlined_call_operand.vmem [shape: f32[8,2], index: 6, kind: input, shape index: {}]   ;;  %s2477_s7 = inlined_call_operand.hbm [shape: f32[2,16,256], index: 7, kind: output, shape index: {}]  }
   0x1   :  { %13 = vsyncpa [#allocation6], 0 }
   0x2   :  { %15 = vsyncpa [#allocation6 + $0x1], 0  ;;  %s2086_s24 = smov 0   ;;  %s2088_s25 = smov 0  }
   0x3   :  { %s2090_s26 = smov 0   ;;  %s2092_s27 = smov 0  }
   0x4 LB: > { %s2107_s28 = sadd.s32 4294967295, %s1993_s27   ;;  %s1713_s29 = sadd.s32 4294967294, %s1993_s27   ;;  %s1993_s27 = sphi %s2092_s27, %s2493_s27   ;;  %s1989_s26 = sphi %s2090_s26, %s2492_s26   ;;  %s1985_s25 = sphi %s2088_s25, %s2491_s25   ;;  %s1981_s24 = sphi %s2086_s24, %s2490_s24  }
   0x5   : > { %s2111_s30 = sadd.s32 1, %s1993_s27   ;;  %s180_s8 = sadd.s32 1, %s1989_s26 }
   0x6   : > { %s177_s9 = ssub.s32 %s1993_s27, %s2111_s30  ;;  %p190_p0 = scmp.ne.s32.totalorder %s1989_s26, %s1985_s25 }
   0x7   : > { %p178_p1 = scmp.eq.s32.totalorder %s177_s9, 0  ;;  %p191_p2 = scmp.eq.s32.totalorder %s2107_s28, 1 }
   0x8   : > { %p196_p3 = scmp.ne.s32.totalorder %s1985_s25, %s1981_s24  ;;  %p197_p4 = scmp.eq.s32.totalorder %s1713_s29, 1 }
   0x9   : > { %s2122_s10 = scalar_select %p178_p1, %s1989_s26, %s180_s8  }
   0xa   : > { %p2124_p5 = por %p191_p2, %p190_p0  ;;  %p2128_p6 = por %p197_p4, %p196_p3 }
   0xb   : > { %p1714_p7 = scmp.ge.s32.totalorder %s1993_s27, 1  ;;  %p204_p8 = scmp.lt.s32.totalorder %s1993_s27, 3 }
   0xc   : > { %s2481_s11 = scalar_select %p2124_p5, 1, 0 }
   0xd   : > { %s2482_s12 = scalar_select %p2128_p6, 1, 0 }
   0xe   : > { %p2478_p9 = scmp.eq.s32.totalorder %s2107_s28, 0  ;;  %p2135_p10 = pnand %p1714_p7, %p204_p8 }
   0xf   : > { %s1995_s14 = smov [#allocation4]   ;;  %s1899_s19 = scalar_lea.hbm %s2471_s1, 512 }
  0x10   : > { %s2483_s13 = scalar_select %p2135_p10, 1, 0 }
  0x11   : > { %s216_s15 = sshll.u32 %s1995_s14, 4  ;;  %p1787_p11 = pneg %p2135_p10  ;;  %s217_s15 = int_to_ptr.vmem [resolvable:$true] %s216_s15 }
  0x12   : > { %p1900_p13 = scmp.ne.s32.totalorder %s2471_s1, %s1899_s19  ;;  %p1906_p3 = scmp.lt.u32.totalorder %s1899_s19, %s2471_s1 }
  0x13   : > { %p2143_p12 = pnand %p2478_p9, %p1787_p11 }
  0x15   : > { %p1901_p0 = pneg %p2143_p12 }
  0x17   : > { %p1902_p1 = pnand %p1901_p0, %p1900_p13 }
  0x19   : > { %p1903_p2 = pneg %p1902_p1 }
  0x1b   : > { %p1908_p4 = pnand %p1906_p3, %p1903_p2 }
  0x1d   : > { %1911 = shalt.err (!%p1908_p4)
}
  0x1e   : > { %s1912_s29 = scalar_lea.vmem %s217_s15, 512  ;;  %p1920_p9 = scmp.lt.s32.totalorder %s217_s15, %s217_s15 }
  0x1f   : > { %p1913_p7 = scmp.ne.s32.totalorder %s217_s15, %s1912_s29  ;;  %p1921_p6 = scmp.lt.s32.totalorder %s1912_s29, %s1912_s29 }
  0x21   : > { %p1915_p8 = pnand %p1913_p7, %p1901_p0  ;;  %p1922_p5 = por %p1921_p6, %p1920_p9 }
  0x23   : > { %p1916_p11 = pneg %p1915_p8 }
  0x25   : > { %p1923_p10 = pnand %p1922_p5, %p1916_p11 }
  0x27   : > { %1926 = shalt.err (!%p1923_p10)
}
  0x28   : > { %s1996_s8 = smov 256   ;;  %s1997_s9 = smov 16  }
  0x29   : > { %1790 = dma.hbm_to_vmem [thread:$0]  (!%p2143_p12), %s2471_s1, 512, %s217_s15, [#allocation5], %s1996_s8, %s1996_s8, %s1997_s9  }
  0x2a   : > { %p2485_p13 = scmp.ne.s32.totalorder %s2483_s13, 0 }
  0x2b   : > { %p2486_p1 = scmp.eq.s32.totalorder (!%p2485_p13), %s2107_s28, 0 }
  0x2c   : > { %255 = sbr.rel (%p2485_p13) target bundleno = 1625 (0x659), region = 48 }
  0x33   : > { %1972 = dma.done.wait (%p2486_p1), [#allocation5], 512   ;;  %p2487_p0 = pmov %p2486_p1 }
  0x34   : > { %p287_p5 = scmp.lt.s32.totalorder %s2107_s28, 1  ;;  %v323_v0 = vlaneseq  ;;  %v1998_v1 = vmov 0   ;;  %vm297_vm0 = vcmask 556032   ;;  %s1999_s20 = smov 34   ;;  %vm318_vm13 = vcmask 1047824  }
  0x35   : > { %1974 = vsyncadd (%p2487_p0), [#allocation5], 4294966784  ;;  %295 = vst [vmem:[#allocation2] sm:$0xff] %v1998_v1  ;;  %1880 = vset.pattern.permute.xlu0 %v1998_v1  ;;  %1881 = vset.pattern.permute.xlu1 %v1998_v1  ;;  %s2000_s21 = smov 1   ;;  %s2001_s22 = smov 3   ;;  %vm313_vm14 = vcmask 277504  }
  0x36   : > { %s288_s16 = scalar_select %p287_p5, %s2107_s28, 1  ;;  %v324_v2 = vand.u32 127, %v323_v0  ;;  %298 = vst.msk [vmem:[#allocation2 + $0x10] sm:$0xff] %vm297_vm0, %v1998_v1  ;;  %v361_v3 = vshrl.u32 %v323_v0, 7 }
  0x37   : > { %s2002_s23 = smov 4   ;;  %s2003_s29 = smov 16  }
  0x38   : > { %s1742_s13 = sshll.u32 %s288_s16, 4  ;;  %v325_v4 = vadd.s32 128, %v324_v2  ;;  %v330_v5 = vand.u32 15, %v324_v2  ;;  %v362_v8 = vsub.s32 0, %v361_v3  ;;  %v366_v10 = vsub.s32 4, %v361_v3  ;;  %s2004_s8 = smov 17  }
  0x39   : > { %s291_s19 = scalar_lea.vmem %s2470_s0, %s1742_s13  ;;  %s2005_s9 = smov 49  }
  0x3a   : > { %v337_v6 = vand.u32 15, %v325_v4  ;;  %vm377_vm1 = vcmp.ge.s32.totalorder %v330_v5, 1  ;;  %v1882_v7 = vld [vmem:[%s291_s19] ss:$8 sps:$4 sm:$0xff]   ;;  %vm443_vm2 = vcmp.lt.s32.totalorder %v330_v5, 15  ;;  %vm490_vm5 = vcmp.lt.s32.totalorder %v330_v5, 14 }
  0x3b   : > { %v1884_v9 = vld [vmem:[%s291_s19 + $0x4] ss:$8 sps:$4 sm:$0xff]   ;;  %309 = vrot.lane.b32.xlu0 %v1882_v7, %s1999_s20  ;;  %vm352_vm10 = vcmp.ge.s32.totalorder %v330_v5, 2  ;;  %s2006_s14 = smov 19   ;;  %s2007_s17 = smov 20  }
  0x3c   : > { %vm378_vm3 = vcmp.ge.s32.totalorder %v337_v6, 1  ;;  %vm444_vm4 = vcmp.lt.s32.totalorder %v337_v6, 15  ;;  %vm491_vm6 = vcmp.lt.s32.totalorder %v337_v6, 14  ;;  %vm353_vm11 = vcmp.ge.s32.totalorder %v337_v6, 2  ;;  %s2008_s16 = smov 51   ;;  %s2009_s13 = smov 32  }
  0x3d   : > { %vm383_vm7 = vmpackc.low %vm378_vm3, %vm377_vm1  ;;  %s2010_s15 = smov 52   ;;  %s2011_s18 = smov 33  }
  0x3e   : > { %v384_v11 = vsel %vm383_vm7, 65537, %v1998_v1  ;;  %vm449_vm8 = vmpackc.low %vm444_vm4, %vm443_vm2  ;;  %s2012_s19 = smov 64   ;;  %p2488_p9 = scmp.ne.s32.totalorder %s2481_s11, 0 }
  0x3f   : > { %v388_v12 = vrot.slane %v384_v11, %v362_v8  ;;  %v450_v13 = vsel %vm449_vm8, 65537, %v1998_v1  ;;  %vm496_vm9 = vmpackc.low %vm491_vm6, %vm490_vm5  ;;  %311 = vrot.lane.b32.xlu0 %v1884_v9, %s1999_s20  ;;  %v392_v14 = vrot.slane %v384_v11, %v366_v10  ;;  %s2013_s20 = smov 65  }
  0x40   : > { %v454_v15 = vrot.slane %v450_v13, %v362_v8  ;;  %v497_v16 = vsel %vm496_vm9, 65537, %v1998_v1  ;;  %vm358_vm12 = vmpackc.low %vm353_vm11, %vm352_vm10  ;;  %v458_v17 = vrot.slane %v450_v13, %v366_v10 }
  0x41   : > { %393 = vrot.lane.b32.xlu1 %v388_v12, %s2000_s21  ;;  %v501_v18 = vrot.slane %v497_v16, %v362_v8  ;;  %v359_v19 = vsel %vm358_vm12, 65537, %v1998_v1  ;;  %v505_v20 = vrot.slane %v497_v16, %v366_v10 }
  0x42   : > { %v2175_v21 = vrot.slane %v359_v19, %v362_v8  ;;  %v367_v22 = vrot.slane %v359_v19, %v366_v10 }
  0x43   : > { %459 = vrot.lane.b32.xlu0 %v454_v15, %s2001_s22 }
  0x44   : > { %vm369_vm15 = vcmp.ne.s16.totalorder %v367_v22, 0  ;;  %vm368_vm1 = vcmp.ne.s16.totalorder %v2175_v21, 0 }
  0x45   : > { %395 = vrot.lane.b32.xlu1 %v392_v14, %s2000_s21  ;;  %s2014_s21 = smov 35  }
  0x47   : > { %506 = vrot.lane.b32.xlu0 %v501_v18, %s2002_s23 }
  0x49   : > { %461 = vrot.lane.b32.xlu1 %v458_v17, %s2001_s22  ;;  %s2015_s22 = smov 36  }
  0x4b   : > { %537 = vrot.lane.b32.xlu0 %v2175_v21, %s2003_s29 }
  0x4d   : > { %508 = vrot.lane.b32.xlu1 %v505_v20, %s2002_s23  ;;  %s2016_s23 = smov 67  }
  0x4f   : > { %568 = vrot.lane.b32.xlu0 %v388_v12, %s2004_s8 }
  0x51   : > { %539 = vrot.lane.b32.xlu1 %v367_v22, %s2003_s29 }
  0x53   : > { %854 = vrot.lane.b32.xlu0 %v388_v12, %s2005_s9 }
  0x55   : > { %570 = vrot.lane.b32.xlu1 %v392_v14, %s2004_s8  ;;  %s2017_s8 = smov 48  }
  0x57   : > { %618 = vrot.lane.b32.xlu0 %v454_v15, %s2006_s14 }
  0x59   : > { %856 = vrot.lane.b32.xlu1 %v392_v14, %s2005_s9  ;;  %s2018_s9 = smov 68  }
  0x5b   : > { %649 = vrot.lane.b32.xlu0 %v501_v18, %s2007_s17 }
  0x5d   : > { %620 = vrot.lane.b32.xlu1 %v458_v17, %s2006_s14  ;;  %s2019_s14 = smov 126  }
  0x5f   : > { %904 = vrot.lane.b32.xlu0 %v454_v15, %s2008_s16 }
  0x61   : > { %651 = vrot.lane.b32.xlu1 %v505_v20, %s2007_s17  ;;  %s2020_s17 = smov 110  }
  0x63   : > { %680 = vrot.lane.b32.xlu0 %v2175_v21, %s2009_s13 }
  0x65   : > { %906 = vrot.lane.b32.xlu1 %v458_v17, %s2008_s16  ;;  %s2021_s16 = smov 127  }
  0x67   : > { %935 = vrot.lane.b32.xlu0 %v501_v18, %s2010_s15 }
  0x69   : > { %682 = vrot.lane.b32.xlu1 %v367_v22, %s2009_s13  ;;  %s2022_s13 = smov 125  }
  0x6b   : > { %711 = vrot.lane.b32.xlu0 %v388_v12, %s2011_s18 }
  0x6d   : > { %937 = vrot.lane.b32.xlu1 %v505_v20, %s2010_s15  ;;  %s2023_s15 = smov 124  }
  0x6f   : > { %966 = vrot.lane.b32.xlu0 %v2175_v21, %s2012_s19 }
  0x71   : > { %713 = vrot.lane.b32.xlu1 %v392_v14, %s2011_s18  ;;  %s2024_s18 = smov 112  }
  0x73   : > { %996 = vrot.lane.b32.xlu0 %v388_v12, %s2013_s20 }
  0x75   : > { %968 = vrot.lane.b32.xlu1 %v367_v22, %s2012_s19 }
  0x77   : > { %761 = vrot.lane.b32.xlu0 %v454_v15, %s2014_s21 }
  0x79   : > { %998 = vrot.lane.b32.xlu1 %v392_v14, %s2013_s20  ;;  %s2025_s20 = smov 111  }
  0x7b   : > { %792 = vrot.lane.b32.xlu0 %v501_v18, %s2015_s22 }
  0x7d   : > { %763 = vrot.lane.b32.xlu1 %v458_v17, %s2014_s21  ;;  %s2026_s21 = smov 79  }
  0x7f   : > { %1046 = vrot.lane.b32.xlu0 %v454_v15, %s2016_s23 }
  0x81   : > { %794 = vrot.lane.b32.xlu1 %v505_v20, %s2015_s22  ;;  %s2027_s22 = smov 109  }
  0x83   : > { %823 = vrot.lane.b32.xlu0 %v2175_v21, %s2017_s8 }
  0x85   : > { %1048 = vrot.lane.b32.xlu1 %v458_v17, %s2016_s23  ;;  %s2028_s23 = smov 78  }
  0x87   : > { %1077 = vrot.lane.b32.xlu0 %v501_v18, %s2018_s9 }
  0x89   : > { %825 = vrot.lane.b32.xlu1 %v367_v22, %s2017_s8  ;;  %s2029_s8 = smov 108  }
  0x8d   : > { %1079 = vrot.lane.b32.xlu1 %v505_v20, %s2018_s9  ;;  %s2030_s9 = smov 77  }
  0xad   : > { %v310_v23 = vpop.permute.xlu0 %309 }
  0xae   : > { %319 = vst.msk [vmem:[#allocation2] sm:$0xff] %vm318_vm13, %v310_v23 }
  0xb1   : > { %v312_v25 = vpop.permute.xlu0 %311 }
  0xb2   : > { %v2187_v26 = vsel %vm313_vm14, %v310_v23, %v312_v25  ;;  %322 = vst.msk [vmem:[#allocation2 + $0x10] sm:$0xff] %vm313_vm14, %v312_v25 }
  0xb3   : > { %v2185_v24 = vpop.permute.xlu1 %393  ;;  %1744 = vmatprep.subr.msk.bf16.mxu0 %vm369_vm15, %v2187_v26  ;;  %vm510_vm15 = vcmask 31744  }
  0xb4   : > { %vm399_vm3 = vcmp.ne.s16.totalorder %v2185_v24, 0 }
  0xb5   : > { %v2193_v28 = vld [vmem:[#allocation2] sm:$0xff]  ;;  %v2197_v30 = vpop.permute.xlu0 %459 }
  0xb6   : > { %427 = vrot.lane.b32.xlu1 %v2193_v28, %s2019_s14  ;;  %v370_v29 = vsel %vm368_vm1, %v2193_v28, 0  ;;  %v402_v37 = vsel %vm399_vm3, %v2193_v28, 0  ;;  %vm465_vm5 = vcmp.ne.s16.totalorder %v2197_v30, 0  ;;  %vm397_vm1 = vcmask 7168  }
  0xb7   : > { %v2191_v27 = vpop.permute.xlu1 %395  ;;  %1195 = vmatpush1.bf16.msra.mxu0 %v370_v29  ;;  %v468_v40 = vsel %vm465_vm5, %v2193_v28, 0  ;;  %vm572_vm3 = vcmask 138240  }
  0xb8   : > { %vm401_vm2 = vcmp.ne.s16.totalorder %v2191_v27, 0  ;;  %v398_v57 = vsel %vm397_vm1, %v2185_v24, %v2191_v27  ;;  %vm653_vm1 = vcmask 162816  }
  0xb9   : > { %v2201_v32 = vld [vmem:[#allocation2 + $0x10] sm:$0xff]  ;;  %v507_v33 = vpop.permute.xlu0 %506 }
  0xba   : > { %431 = vrot.lane.b32.xlu0 %v2201_v32, %s2019_s14  ;;  %606 = vrot.lane.b32.xlu1 %v2201_v32, %s2020_s17  ;;  %v404_v35 = vsel %vm401_vm2, %v2201_v32, 0  ;;  %vm512_vm6 = vcmp.ne.s16.totalorder %v507_v33, 0 }
  0xbb   : > { %v2199_v31 = vpop.permute.xlu1 %461  ;;  %v515_v43 = vsel %vm512_vm6, %v2193_v28, 0  ;;  %vm400_vm6 = vcmp.ne.s16.totalorder %v398_v57, 0 }
  0xbc   : > { %vm467_vm4 = vcmp.ne.s16.totalorder %v2199_v31, 0  ;;  %v403_v62 = vsel %vm400_vm6, %v2187_v26, 0 }
  0xbd   : > { %v2219_v38 = vpop.permute.xlu0 %537  ;;  %v470_v39 = vsel %vm467_vm4, %v2201_v32, 0  ;;  %vm463_vm4 = vcmask 23552  }
  0xbe   : > { %602 = vrot.lane.b32.xlu0 %v2193_v28, %s2020_s17  ;;  %412 = vrot.lane.b32.xlu1 %v404_v35, %s2021_s16  ;;  %vm543_vm9 = vcmp.ne.s16.totalorder %v2219_v38, 0  ;;  %v464_v60 = vsel %vm463_vm4, %v2197_v30, %v2199_v31 }
  0xbf   : > { %v509_v34 = vpop.permute.xlu1 %508  ;;  %v546_v47 = vsel %vm543_vm9, %v2193_v28, 0 }
  0xc0   : > { %vm514_vm7 = vcmp.ne.s16.totalorder %v509_v34, 0  ;;  %v511_v56 = vsel %vm510_vm15, %v507_v33, %v509_v34  ;;  %vm908_vm15 = vcmask 416768  }
  0xc1   : > { %v569_v42 = vpop.permute.xlu0 %568  ;;  %v517_v44 = vsel %vm514_vm7, %v2201_v32, 0  ;;  %vm513_vm5 = vcmp.ne.s16.totalorder %v511_v56, 0  ;;  %vm858_vm7 = vcmask 400384  }
  0xc2   : > { %429 = vrot.lane.b32.xlu1 %v2187_v26, %s2019_s14  ;;  %408 = vrot.lane.b32.xlu0 %v402_v37, %s2021_s16  ;;  %vm574_vm10 = vcmp.ne.s16.totalorder %v569_v42, 0  ;;  %v516_v61 = vsel %vm513_vm5, %v2187_v26, 0  ;;  %s2031_s14 = smov 96  }
  0xc3   : > { %v2212_v36 = vpop.permute.xlu1 %539  ;;  %v577_v49 = vsel %vm574_vm10, %v2193_v28, 0  ;;  %vm466_vm10 = vcmp.ne.s16.totalorder %v464_v60, 0 }
  0xc4   : > { %vm545_vm8 = vcmp.ne.s16.totalorder %v2212_v36, 0  ;;  %v469_v3 = vsel %vm466_vm10, %v2187_v26, 0 }
  0xc5   : > { %v548_v46 = vsel %vm545_vm8, %v2201_v32, 0  ;;  %v855_v48 = vpop.permute.xlu0 %854  ;;  %vm541_vm8 = vcmask 130048  }
  0xc6   : > { %478 = vrot.lane.b32.xlu1 %v470_v39, %s2022_s13  ;;  %474 = vrot.lane.b32.xlu0 %v468_v40, %s2022_s13  ;;  %vm860_vm12 = vcmp.ne.s16.totalorder %v855_v48, 0  ;;  %v542_v1 = vsel %vm541_vm8, %v2219_v38, %v2212_v36 }
  0xc7   : > { %v571_v41 = vpop.permute.xlu1 %570  ;;  %v863_v52 = vsel %vm860_vm12, %v2193_v28, 0 }
  0xc8   : > { %vm576_vm11 = vcmp.ne.s16.totalorder %v571_v41, 0  ;;  %v573_v59 = vsel %vm572_vm3, %v569_v42, %v571_v41 }
  0xc9   : > { %v579_v50 = vsel %vm576_vm11, %v2201_v32, 0  ;;  %v619_v53 = vpop.permute.xlu0 %618  ;;  %vm575_vm9 = vcmp.ne.s16.totalorder %v573_v59, 0  ;;  %vm622_vm11 = vcmask 154624  }
  0xca   : > { %521 = vrot.lane.b32.xlu1 %v515_v43, %s2023_s15  ;;  %525 = vrot.lane.b32.xlu0 %v517_v44, %s2023_s15  ;;  %vm624_vm2 = vcmp.ne.s16.totalorder %v619_v53, 0  ;;  %v578_v2 = vsel %vm575_vm9, %v2187_v26, 0  ;;  %vm939_vm9 = vcmask 424960  }
  0xcb   : > { %v857_v45 = vpop.permute.xlu1 %856  ;;  %v627_v58 = vsel %vm624_vm2, %v2193_v28, 0 }
  0xcc   : > { %vm862_vm14 = vcmp.ne.s16.totalorder %v857_v45, 0  ;;  %v859_v0 = vsel %vm858_vm7, %v855_v48, %v857_v45  ;;  %vm684_vm7 = vcmask 261120  }
  0xcd   : > { %v865_v55 = vsel %vm862_vm14, %v2201_v32, 0  ;;  %v650_v4 = vpop.permute.xlu0 %649  ;;  %vm861_vm12 = vcmp.ne.s16.totalorder %v859_v0, 0 }
  0xce   : > { %556 = vrot.lane.b32.xlu1 %v548_v46, %s2024_s18  ;;  %552 = vrot.lane.b32.xlu0 %v546_v47, %s2024_s18  ;;  %v864_v7 = vsel %vm861_vm12, %v2187_v26, 0  ;;  %vm655_vm6 = vcmp.ne.s16.totalorder %v650_v4, 0 }
  0xcf   : > { %v621_v51 = vpop.permute.xlu1 %620  ;;  %v658_v21 = vsel %vm655_vm6, %v2193_v28, 0 }
  0xd0   : > { %vm626_vm13 = vcmp.ne.s16.totalorder %v621_v51, 0  ;;  %v623_v5 = vsel %vm622_vm11, %v619_v53, %v621_v51 }
  0xd1   : > { %v629_v54 = vsel %vm626_vm13, %v2201_v32, 0  ;;  %vm544_vm13 = vcmp.ne.s16.totalorder %v542_v1, 0  ;;  %vm625_vm14 = vcmp.ne.s16.totalorder %v623_v5, 0  ;;  %v905_v9 = vpop.permute.xlu0 %904 }
  0xd2   : > { %583 = vrot.lane.b32.xlu1 %v577_v49, %s2025_s20  ;;  %587 = vrot.lane.b32.xlu0 %v579_v50, %s2025_s20  ;;  %v547_v8 = vsel %vm544_vm13, %v2187_v26, 0  ;;  %v628_v10 = vsel %vm625_vm14, %v2187_v26, 0  ;;  %vm910_vm5 = vcmp.ne.s16.totalorder %v905_v9, 0 }
  0xd3   : > { %v652_v63 = vpop.permute.xlu1 %651  ;;  %v913_v20 = vsel %vm910_vm5, %v2193_v28, 0 }
  0xd4   : > { %vm657_vm2 = vcmp.ne.s16.totalorder %v652_v63, 0  ;;  %v654_v13 = vsel %vm653_vm1, %v650_v4, %v652_v63  ;;  %vm715_vm1 = vcmask 269312  }
  0xd5   : > { %v660_v14 = vsel %vm657_vm2, %v2201_v32, 0  ;;  %v681_v15 = vpop.permute.xlu0 %680  ;;  %vm656_vm4 = vcmp.ne.s16.totalorder %v654_v13, 0  ;;  %vm970_vm2 = vcmask 523264  }
  0xd6   : > { %869 = vrot.lane.b32.xlu1 %v863_v52, %s2026_s21  ;;  %604 = vrot.lane.b32.xlu0 %v2187_v26, %s2020_s17  ;;  %v659_v18 = vsel %vm656_vm4, %v2187_v26, 0  ;;  %s2032_s17 = smov 76  }
  0xd7   : > { %v907_v6 = vpop.permute.xlu1 %906 }
  0xd8   : > { %v909_v12 = vsel %vm908_vm15, %v905_v9, %v907_v6  ;;  %vm912_vm10 = vcmp.ne.s16.totalorder %v907_v6, 0  ;;  %vm686_vm15 = vcmp.ne.s16.totalorder %v681_v15, 0 }
  0xd9   : > { %vm911_vm3 = vcmp.ne.s16.totalorder %v909_v12, 0  ;;  %v936_v19 = vpop.permute.xlu0 %935  ;;  %v915_v27 = vsel %vm912_vm10, %v2201_v32, 0  ;;  %v689_v36 = vsel %vm686_vm15, %v2193_v28, 0  ;;  %vm1000_vm10 = vcmask 531456  }
  0xda   : > { %637 = vrot.lane.b32.xlu1 %v629_v54, %s2027_s22  ;;  %873 = vrot.lane.b32.xlu0 %v865_v55, %s2026_s21  ;;  %v914_v17 = vsel %vm911_vm3, %v2187_v26, 0  ;;  %vm941_vm14 = vcmp.ne.s16.totalorder %v936_v19, 0 }
  0xdb   : > { %v683_v11 = vpop.permute.xlu1 %682  ;;  %v944_v35 = vsel %vm941_vm14, %v2193_v28, 0  ;;  %vm765_vm14 = vcmask 285696  }
  0xdc   : > { %vm688_vm11 = vcmp.ne.s16.totalorder %v683_v11, 0  ;;  %v685_v23 = vsel %vm684_vm7, %v681_v15, %v683_v11 }
  0xdd   : > { %v691_v25 = vsel %vm688_vm11, %v2201_v32, 0  ;;  %vm687_vm12 = vcmp.ne.s16.totalorder %v685_v23, 0  ;;  %v712_v29 = vpop.permute.xlu0 %711  ;;  %v1890_v23 = vld [vmem:[#allocation4 + $0xc] ss:$16 sps:$4 sm:$0xff]  }
  0xde   : > { %890 = vrot.lane.b32.xlu1 %v2187_v26, %s2028_s23  ;;  %633 = vrot.lane.b32.xlu0 %v627_v58, %s2027_s22  ;;  %v690_v33 = vsel %vm687_vm12, %v2187_v26, 0  ;;  %vm717_vm7 = vcmp.ne.s16.totalorder %v712_v29, 0 }
  0xdf   : > { %v938_v16 = vpop.permute.xlu1 %937  ;;  %v720_v48 = vsel %vm717_vm7, %v2193_v28, 0  ;;  %1728 = vmatprep.mubr.msk.bf16.mxu1 %vm541_vm8, %v1890_v23  ;;  %vm414_vm8 = vcmask 1039360  }
  0xe0   : > { %v940_v24 = vsel %vm939_vm9, %v936_v19, %v938_v16  ;;  %vm943_vm3 = vcmp.ne.s16.totalorder %v938_v16, 0  ;;  %v1887_v16 = vld [vmem:[#allocation4 + $0x4] ss:$16 sps:$4 sm:$0xff]  }
  0xe1   : > { %vm942_vm13 = vcmp.ne.s16.totalorder %v940_v24, 0  ;;  %v967_v34 = vpop.permute.xlu0 %966  ;;  %v946_v41 = vsel %vm943_vm3, %v2201_v32, 0  ;;  %1226 = vmatprep.mubr.bf16.mxu0 %v1887_v16 }
  0xe2   : > { %523 = vrot.lane.b32.xlu1 %v516_v61, %s2023_s15  ;;  %410 = vrot.lane.b32.xlu0 %v403_v62, %s2021_s16  ;;  %v945_v31 = vsel %vm942_vm13, %v2187_v26, 0  ;;  %s2033_s16 = smov 95   ;;  %vm972_vm9 = vcmp.ne.s16.totalorder %v967_v34, 0  ;;  %s2035_s15 = smov 63  }
  0xe3   : > { %v714_v22 = vpop.permute.xlu1 %713  ;;  %v975_v47 = vsel %vm972_vm9, %v2193_v28, 0 }
  0xe4   : > { %vm719_vm4 = vcmp.ne.s16.totalorder %v714_v22, 0  ;;  %v716_v38 = vsel %vm715_vm1, %v712_v29, %v714_v22 }
  0xe5   : > { %v722_v40 = vsel %vm719_vm4, %v2201_v32, 0  ;;  %vm718_vm5 = vcmp.ne.s16.totalorder %v716_v38, 0  ;;  %v997_v42 = vpop.permute.xlu0 %996 }
  0xe6   : > { %585 = vrot.lane.b32.xlu1 %v578_v2, %s2025_s20  ;;  %476 = vrot.lane.b32.xlu0 %v469_v3, %s2022_s13  ;;  %v721_v45 = vsel %vm718_vm5, %v2187_v26, 0  ;;  %s2034_s13 = smov 94   ;;  %vm1002_vm13 = vcmp.ne.s16.totalorder %v997_v42, 0  ;;  %vm796_vm5 = vcmask 293888   ;;  %s2038_s20 = smov 92  }
  0xe7   : > { %v969_v30 = vpop.permute.xlu1 %968  ;;  %v1005_v56 = vsel %vm1002_vm13, %v2193_v28, 0  ;;  %vm827_vm13 = vcmask 392192  }
  0xe8   : > { %v971_v39 = vsel %vm970_vm2, %v967_v34, %v969_v30  ;;  %vm974_vm11 = vcmp.ne.s16.totalorder %v969_v30, 0 }
  0xe9   : > { %vm973_vm6 = vcmp.ne.s16.totalorder %v971_v39, 0  ;;  %v762_v46 = vpop.permute.xlu0 %761  ;;  %v977_v51 = vsel %vm974_vm11, %v2201_v32, 0 }
  0xea   : > { %871 = vrot.lane.b32.xlu1 %v864_v7, %s2026_s21  ;;  %554 = vrot.lane.b32.xlu0 %v547_v8, %s2024_s18  ;;  %v976_v44 = vsel %vm973_vm6, %v2187_v26, 0  ;;  %vm767_vm4 = vcmp.ne.s16.totalorder %v762_v46, 0  ;;  %s2037_s18 = smov 62   ;;  %vm1050_vm6 = vcmask 547840   ;;  %s2039_s21 = smov 61  }
  0xeb   : > { %v999_v37 = vpop.permute.xlu1 %998  ;;  %v770_v2 = vsel %vm767_vm4, %v2193_v28, 0 }
  0xec   : > { %v1001_v50 = vsel %vm1000_vm10, %v997_v42, %v999_v37  ;;  %vm1004_vm15 = vcmp.ne.s16.totalorder %v999_v37, 0  ;;  %v1159_v37 = vld [vmem:[%s2472_s2] sm:$0xff] }
  0xed   : > { %vm1003_vm12 = vcmp.ne.s16.totalorder %v1001_v50, 0  ;;  %v2297_v52 = vpop.permute.xlu0 %792  ;;  %v1007_v60 = vsel %vm1004_vm15, %v2201_v32, 0 }
  0xee   : > { %888 = vrot.lane.b32.xlu1 %v2193_v28, %s2028_s23  ;;  %635 = vrot.lane.b32.xlu0 %v628_v10, %s2027_s22  ;;  %v1006_v54 = vsel %vm1003_vm12, %v2187_v26, 0  ;;  %vm798_vm11 = vcmp.ne.s16.totalorder %v2297_v52, 0  ;;  %s2040_s22 = smov 80  }
  0xef   : > { %v764_v43 = vpop.permute.xlu1 %763 }
  0xf0   : > { %vm769_vm1 = vcmp.ne.s16.totalorder %v764_v43, 0  ;;  %v766_v58 = vsel %vm765_vm14, %v762_v46, %v764_v43 }
  0xf1   : > { %v1047_v55 = vpop.permute.xlu0 %1046  ;;  %v772_v59 = vsel %vm769_vm1, %v2201_v32, 0  ;;  %vm768_vm3 = vcmp.ne.s16.totalorder %v766_v58, 0 }
  0xf2   : > { %668 = vrot.lane.b32.xlu1 %v660_v14, %s2029_s8  ;;  %892 = vrot.lane.b32.xlu0 %v2201_v32, %s2028_s23  ;;  %v771_v63 = vsel %vm768_vm3, %v2187_v26, 0  ;;  %vm1052_vm12 = vcmp.ne.s16.totalorder %v1047_v55, 0  ;;  %v801_v14 = vsel %vm798_vm11, %v2193_v28, 0  ;;  %s2041_s23 = smov 60   ;;  %vm558_vm11 = vcmask 916480  }
  0xf3   : > { %v795_v49 = vpop.permute.xlu1 %794  ;;  %v1055_v15 = vsel %vm1052_vm12, %v2193_v28, 0  ;;  %vm894_vm12 = vcmask 637952  }
  0xf4   : > { %vm800_vm7 = vcmp.ne.s16.totalorder %v795_v49, 0  ;;  %v797_v3 = vsel %vm796_vm5, %v2297_v52, %v795_v49 }
  0xf5   : > { %v2309_v61 = vpop.permute.xlu0 %823  ;;  %v803_v7 = vsel %vm800_vm7, %v2201_v32, 0  ;;  %vm799_vm9 = vcmp.ne.s16.totalorder %v797_v3, 0  ;;  %vm480_vm7 = vcmask 1022976  }
  0xf6   : > { %921 = vrot.lane.b32.xlu1 %v914_v17, %s2030_s9  ;;  %666 = vrot.lane.b32.xlu0 %v659_v18, %s2029_s8  ;;  %v802_v10 = vsel %vm799_vm9, %v2187_v26, 0  ;;  %vm875_vm9 = vcmask 646144  }
  0xf7   : > { %v2301_v53 = vpop.permute.xlu1 %1048 }
  0xf8   : > { %v1051_v4 = vsel %vm1050_vm6, %v1047_v55, %v2301_v53  ;;  %vm1054_vm14 = vcmp.ne.s16.totalorder %v2301_v53, 0  ;;  %vm433_vm6 = vcmask 1031168  }
  0xf9   : > { %v1078_v0 = vpop.permute.xlu0 %1077  ;;  %vm1053_vm10 = vcmp.ne.s16.totalorder %v1051_v4, 0 }
  0xfa   : > { %919 = vrot.lane.b32.xlu1 %v913_v20, %s2030_s9  ;;  %664 = vrot.lane.b32.xlu0 %v658_v21, %s2029_s8  ;;  %v1056_v11 = vsel %vm1053_vm10, %v2187_v26, 0  ;;  %v1057_v21 = vsel %vm1054_vm14, %v2201_v32, 0  ;;  %vm1083_vm4 = vcmp.ne.s16.totalorder %v1078_v0, 0  ;;  %vm527_vm10 = vcmask 1014784  }
  0xfb   : > { %v826_v57 = vpop.permute.xlu1 %825  ;;  %v1086_v34 = vsel %vm1083_vm4, %v2193_v28, 0  ;;  %vm608_vm14 = vcmask 900096   ;;  %vm956_vm4 = vcmask 621568  }
  0xfc   : > { %vm831_vm15 = vcmp.ne.s16.totalorder %v826_v57, 0  ;;  %v828_v17 = vsel %vm827_vm13, %v2309_v61, %v826_v57  ;;  %vm589_vm13 = vcmask 908288  }
  0xfd   : > { %v834_v22 = vsel %vm831_vm15, %v2201_v32, 0  ;;  %vm830_vm1 = vcmp.ne.s16.totalorder %v828_v17, 0  ;;  %vm639_vm15 = vcmask 891904  }
  0xfe   : > { %699 = vrot.lane.b32.xlu1 %v691_v25, %s2031_s14  ;;  %923 = vrot.lane.b32.xlu0 %v915_v27, %s2030_s9  ;;  %v833_v27 = vsel %vm830_vm1, %v2187_v26, 0  ;;  %vm925_vm1 = vcmask 629760  }
  0xff   : > { %v2311_v62 = vpop.permute.xlu1 %1079 }
 0x100   : > { %v1082_v18 = vsel %vm297_vm0, %v1078_v0, %v2311_v62  ;;  %vm829_vm0 = vcmp.ne.s16.totalorder %v2309_v61, 0  ;;  %vm1085_vm5 = vcmp.ne.s16.totalorder %v2311_v62, 0 }
 0x101   : > { %vm1084_vm3 = vcmp.ne.s16.totalorder %v1082_v18, 0 }
 0x102   : > { %952 = vrot.lane.b32.xlu1 %v945_v31, %s2032_s17  ;;  %697 = vrot.lane.b32.xlu0 %v690_v33, %s2031_s14  ;;  %v1087_v29 = vsel %vm1084_vm3, %v2187_v26, 0  ;;  %v832_v33 = vsel %vm829_vm0, %v2193_v28, 0  ;;  %vm670_vm3 = vcmask 883712   ;;  %vm701_vm0 = vcmask 785408  }
 0x106   : > { %950 = vrot.lane.b32.xlu1 %v944_v35, %s2032_s17  ;;  %695 = vrot.lane.b32.xlu0 %v689_v36, %s2031_s14  ;;  %v1088_v36 = vsel %vm1085_vm5, %v2201_v32, 0  ;;  %vm732_vm5 = vcmask 777216  }
 0x10a   : > { %730 = vrot.lane.b32.xlu1 %v722_v40, %s2033_s16  ;;  %954 = vrot.lane.b32.xlu0 %v946_v41, %s2032_s17  ;;  %s1743_s17 = sshll.u32 %s2107_s28, 9 }
 0x10e   : > { %983 = vrot.lane.b32.xlu1 %v976_v44, %s2012_s19  ;;  %728 = vrot.lane.b32.xlu0 %v721_v45, %s2033_s16 }
 0x112   : > { %981 = vrot.lane.b32.xlu1 %v975_v47, %s2012_s19  ;;  %726 = vrot.lane.b32.xlu0 %v720_v48, %s2033_s16 }
 0x116   : > { %749 = vrot.lane.b32.xlu1 %v2201_v32, %s2034_s13  ;;  %985 = vrot.lane.b32.xlu0 %v977_v51, %s2012_s19  ;;  %s2036_s19 = smov 93  }
 0x11a   : > { %1013 = vrot.lane.b32.xlu1 %v1006_v54, %s2035_s15  ;;  %747 = vrot.lane.b32.xlu0 %v2187_v26, %s2034_s13 }
 0x11e   : > { %1011 = vrot.lane.b32.xlu1 %v1005_v56, %s2035_s15  ;;  %745 = vrot.lane.b32.xlu0 %v2193_v28, %s2034_s13 }
 0x122   : > { %780 = vrot.lane.b32.xlu1 %v772_v59, %s2036_s19  ;;  %1015 = vrot.lane.b32.xlu0 %v1007_v60, %s2035_s15  ;;  %s2426_s15 = scalar_lea.hbm %s2477_s7, %s1743_s17 }
 0x126   : > { %1032 = vrot.lane.b32.xlu1 %v2187_v26, %s2037_s18  ;;  %778 = vrot.lane.b32.xlu0 %v771_v63, %s2036_s19 }
 0x128   : > { %v2315_v1 = vpop.permute.xlu1 %427 }
 0x12a   : > { %1030 = vrot.lane.b32.xlu1 %v2193_v28, %s2037_s18  ;;  %776 = vrot.lane.b32.xlu0 %v770_v2, %s2036_s19  ;;  %v1160_v28 = vld [vmem:[%s2472_s2 + $0x8] sm:$0xff] }
 0x12c   : > { %v2321_v5 = vpop.permute.xlu0 %431  ;;  %v2323_v6 = vpop.permute.xlu1 %606 }
 0x12e   : > { %811 = vrot.lane.b32.xlu1 %v803_v7, %s2038_s20  ;;  %1034 = vrot.lane.b32.xlu0 %v2201_v32, %s2037_s18  ;;  %s2044_s18 = smov [#allocation7]  }
 0x130   : > { %v2327_v8 = vpop.permute.xlu0 %602  ;;  %v2329_v9 = vpop.permute.xlu1 %412 }
 0x132   : > { %1063 = vrot.lane.b32.xlu1 %v1056_v11, %s2039_s21  ;;  %809 = vrot.lane.b32.xlu0 %v802_v10, %s2038_s20 }
 0x134   : > { %v2334_v12 = vpop.permute.xlu1 %429  ;;  %v409_v13 = vpop.permute.xlu0 %408 }
 0x135   : > { %v435_v47 = vsel %vm433_vm6, %v2334_v12, %v2321_v5  ;;  %v434_v50 = vsel %vm433_vm6, %v2315_v1, %v2334_v12  ;;  %vm1017_vm6 = vcmask 515072  }
 0x136   : > { %1061 = vrot.lane.b32.xlu1 %v1055_v15, %s2039_s21  ;;  %807 = vrot.lane.b32.xlu0 %v801_v14, %s2038_s20  ;;  %s1931_s20 = sshll.u32 %s2044_s18, 4  ;;  %s1932_s20 = int_to_ptr.vmem [resolvable:$false] %s1931_s20 }
 0x138   : > { %v479_v19 = vpop.permute.xlu1 %478  ;;  %v2342_v20 = vpop.permute.xlu0 %474 }
 0x13a   : > { %842 = vrot.lane.b32.xlu1 %v834_v22, %s2040_s22  ;;  %1065 = vrot.lane.b32.xlu0 %v1057_v21, %s2039_s21  ;;  %s1933_s21 = scalar_lea.vmem %s1932_s20, 1024 }
 0x13c   : > { %v2346_v24 = vpop.permute.xlu1 %521  ;;  %v526_v25 = vpop.permute.xlu0 %525 }
 0x13e   : > { %1094 = vrot.lane.b32.xlu1 %v1087_v29, %s2041_s23  ;;  %840 = vrot.lane.b32.xlu0 %v833_v27, %s2040_s22 }
 0x140   : > { %v557_v30 = vpop.permute.xlu1 %556  ;;  %v2352_v31 = vpop.permute.xlu0 %552 }
 0x142   : > { %1092 = vrot.lane.b32.xlu1 %v1086_v34, %s2041_s23  ;;  %838 = vrot.lane.b32.xlu0 %v832_v33, %s2040_s22 }
 0x144   : > { %v2357_v26 = vpop.permute.xlu1 %583  ;;  %v588_v35 = vpop.permute.xlu0 %587 }
 0x146   : > { %1096 = vrot.lane.b32.xlu0 %v1088_v36, %s2041_s23  ;;  %s284_s23 = sand.u32 1, %s1985_s25  }
 0x147   : > { %s1719_s8 = sshll.u32 %s284_s23, 5  ;;  %s2428_s19 = scalar_lea.sflag [#allocation6], %s284_s23 }
 0x148   : > { %v870_v38 = vpop.permute.xlu1 %869  ;;  %v2363_v39 = vpop.permute.xlu0 %604  ;;  %s286_s9 = scalar_lea.vmem [#allocation7], %s1719_s8 }
 0x149   : > { %v609_v12 = vsel %vm608_vm14, %v2327_v8, %v2363_v39  ;;  %s1639_s14 = sshll.u32 %s286_s9, 4  ;;  %s2419_s14 = int_to_ptr.vmem [resolvable:$true] %s1639_s14 }
 0x14a   : > { %1163 = vperm.xlu0 %1880, %v1159_v37   ;;  %s1927_s28 = scalar_lea.vmem %s2419_s14, 512  ;;  %p1934_p2 = scmp.lt.s32.totalorder %s2419_s14, %s1932_s20 }
 0x14b   : > { %p1928_p6 = scmp.ne.s32.totalorder %s2419_s14, %s1927_s28  ;;  %p1935_p3 = scmp.lt.s32.totalorder %s1933_s21, %s1927_s28 }
 0x14c   : > { %v2368_v40 = vpop.permute.xlu1 %637  ;;  %v874_v41 = vpop.permute.xlu0 %873 }
 0x14d   : > { %p1929_p10 = pnand %p1928_p6, %p2488_p9  ;;  %p1936_p4 = por %p1935_p3, %p1934_p2 }
 0x14e   : > { %1168 = vperm.xlu0 %1880, %v1160_v28  }
 0x14f   : > { %p1930_p12 = pneg %p1929_p10 }
 0x150   : > { %v891_v42 = vpop.permute.xlu1 %890  ;;  %v2370_v43 = vpop.permute.xlu0 %633 }
 0x151   : > { %p1937_p7 = pnand %p1936_p4, %p1930_p12 }
 0x154   : > { %v524_v32 = vpop.permute.xlu1 %523  ;;  %v411_v44 = vpop.permute.xlu0 %410 }
 0x155   : > { %v416_v45 = vsel %vm414_vm8, %v411_v44, %v2329_v9  ;;  %v415_v46 = vsel %vm414_vm8, %v409_v13, %v411_v44  ;;  %v529_v57 = vsel %vm527_vm10, %v524_v32, %v526_v25  ;;  %v528_v60 = vsel %vm527_vm10, %v2346_v24, %v524_v32 }
 0x156   : > { %1196 = vmatprep.subr.bf16.mxu0 %v416_v45  ;;  %v610_v9 = vsel %vm608_vm14, %v2363_v39, %v2323_v6  ;;  %vm751_vm8 = vcmask 769024   ;;  %vm1067_vm10 = vcmask 498688   ;;  %vm1285_vm14 = vcmask 64512  }
 0x157   : > { %1197 = vmatpush1.bf16.msra.mxu0 %v415_v46 }
 0x158   : > { %v586_v48 = vpop.permute.xlu1 %585  ;;  %v477_v49 = vpop.permute.xlu0 %476  ;;  %1198 = vmatprep.subr.bf16.mxu0 %v435_v47 }
 0x159   : > { %v482_v51 = vsel %vm480_vm7, %v477_v49, %v479_v19  ;;  %v481_v56 = vsel %vm480_vm7, %v2342_v20, %v477_v49  ;;  %v591_v3 = vsel %vm589_vm13, %v586_v48, %v588_v35  ;;  %v590_v7 = vsel %vm589_vm13, %v2357_v26, %v586_v48 }
 0x15a   : > { %vm782_vm7 = vcmask 760832   ;;  %vm2043_vm13 = vmmov 0  }
 0x15b   : > { %1199 = vmatpush1.bf16.msra.mxu0 %v434_v50 }
 0x15c   : > { %v872_v52 = vpop.permute.xlu1 %871  ;;  %v555_v53 = vpop.permute.xlu0 %554  ;;  %1200 = vmatprep.subr.bf16.mxu0 %v482_v51 }
 0x15d   : > { %v877_v54 = vsel %vm875_vm9, %v872_v52, %v874_v41  ;;  %v876_v55 = vsel %vm875_vm9, %v870_v38, %v872_v52  ;;  %v560_v61 = vsel %vm558_vm11, %v555_v53, %v557_v30  ;;  %v559_v1 = vsel %vm558_vm11, %v2352_v31, %v555_v53 }
 0x15e   : > { %1237 = vmatprep.subr.bf16.mxu1 %v877_v54  ;;  %vm813_vm9 = vcmask 752640   ;;  %vm844_vm11 = vcmask 654336  }
 0x15f   : > { %1201 = vmatpush1.bf16.msra.mxu0 %v481_v56  ;;  %1238 = vmatpush1.bf16.msra.mxu1 %v876_v55 }
 0x160   : > { %v889_v58 = vpop.permute.xlu1 %888  ;;  %v636_v59 = vpop.permute.xlu0 %635  ;;  %1202 = vmatprep.subr.bf16.mxu0 %v529_v57 }
 0x161   : > { %v895_v2 = vsel %vm894_vm12, %v889_v58, %v891_v42  ;;  %v641_v13 = vsel %vm639_vm15, %v636_v59, %v2368_v40  ;;  %v640_v17 = vsel %vm639_vm15, %v2370_v43, %v636_v59  ;;  %vm1365_vm15 = vcmask 1041408  }
 0x163   : > { %1203 = vmatpush1.bf16.msra.mxu0 %v528_v60 }
 0x164   : > { %v669_v62 = vpop.permute.xlu1 %668  ;;  %v893_v63 = vpop.permute.xlu0 %892  ;;  %1204 = vmatprep.subr.bf16.mxu0 %v560_v61 }
 0x165   : > { %v896_v0 = vsel %vm894_vm12, %v891_v42, %v893_v63  ;;  %vm1098_vm12 = vcmask 490496  }
 0x166   : > { %1239 = vmatprep.subr.bf16.mxu1 %v896_v0 }
 0x167   : > { %1205 = vmatpush1.bf16.msra.mxu0 %v559_v1  ;;  %1240 = vmatpush1.bf16.msra.mxu1 %v895_v2 }
 0x168   : > { %v922_v4 = vpop.permute.xlu1 %921  ;;  %v667_v5 = vpop.permute.xlu0 %666  ;;  %1206 = vmatprep.subr.bf16.mxu0 %v591_v3 }
 0x169   : > { %v672_v18 = vsel %vm670_vm3, %v667_v5, %v669_v62 }
 0x16b   : > { %1207 = vmatpush1.bf16.msra.mxu0 %v590_v7 }
 0x16c   : > { %v920_v10 = vpop.permute.xlu1 %919  ;;  %v665_v11 = vpop.permute.xlu0 %664  ;;  %1208 = vmatprep.subr.bf16.mxu0 %v610_v9 }
 0x16d   : > { %v926_v6 = vsel %vm925_vm1, %v920_v10, %v922_v4  ;;  %v671_v8 = vsel %vm670_vm3, %v665_v11, %v667_v5 }
 0x16f   : > { %1209 = vmatpush1.bf16.msra.mxu0 %v609_v12  ;;  %v1885_v12 = vld [vmem:[#allocation4] ss:$16 sps:$4 sm:$0xff]  }
 0x170   : > { %v700_v14 = vpop.permute.xlu1 %699  ;;  %v924_v15 = vpop.permute.xlu0 %923  ;;  %1210 = vmatprep.subr.bf16.mxu0 %v641_v13 }
 0x171   : > { %v927_v16 = vsel %vm925_vm1, %v922_v4, %v924_v15  ;;  %vm1361_vm1 = vcmask 15360  }
 0x172   : > { %1241 = vmatprep.subr.bf16.mxu1 %v927_v16 }
 0x173   : > { %1211 = vmatpush1.bf16.msra.mxu0 %v640_v17  ;;  %1242 = vmatpush1.bf16.msra.mxu1 %v926_v6  ;;  %v1888_v17 = vld [vmem:[#allocation4 + $0x8] ss:$16 sps:$4 sm:$0xff]  }
 0x174   : > { %v953_v19 = vpop.permute.xlu1 %952  ;;  %v698_v20 = vpop.permute.xlu0 %697  ;;  %1212 = vmatprep.subr.bf16.mxu0 %v672_v18 }
 0x175   : > { %v703_v21 = vsel %vm701_vm0, %v698_v20, %v700_v14 }
 0x177   : > { %1213 = vmatpush1.bf16.msra.mxu0 %v671_v8 }
 0x178   : > { %v951_v22 = vpop.permute.xlu1 %950  ;;  %v696_v23 = vpop.permute.xlu0 %695  ;;  %1214 = vmatprep.subr.bf16.mxu0 %v703_v21 }
 0x179   : > { %v702_v24 = vsel %vm701_vm0, %v696_v23, %v698_v20  ;;  %v957_v30 = vsel %vm956_vm4, %v951_v22, %v953_v19 }
 0x17b   : > { %1215 = vmatpush1.bf16.msra.mxu0 %v702_v24 }
 0x17c   : > { %v731_v25 = vpop.permute.xlu1 %730  ;;  %v955_v27 = vpop.permute.xlu0 %954 }
 0x17d   : > { %v958_v29 = vsel %vm956_vm4, %v953_v19, %v955_v27 }
 0x17e   : > { %1243 = vmatprep.subr.bf16.mxu1 %v958_v29 }
 0x17f   : > { %1244 = vmatpush1.bf16.msra.mxu1 %v957_v30 }
 0x180   : > { %v984_v31 = vpop.permute.xlu1 %983  ;;  %v729_v33 = vpop.permute.xlu0 %728 }
 0x181   : > { %v734_v34 = vsel %vm732_vm5, %v729_v33, %v731_v25 }
 0x182   : > { %1216 = vmatprep.subr.bf16.mxu0 %v734_v34 }
 0x184   : > { %v982_v26 = vpop.permute.xlu1 %981  ;;  %v727_v35 = vpop.permute.xlu0 %726 }
 0x185   : > { %v733_v36 = vsel %vm732_vm5, %v727_v35, %v729_v33  ;;  %v987_v28 = vsel %vm970_vm2, %v982_v26, %v984_v31 }
 0x186   : > { %1217 = vmatpush1.bf16.msra.mxu0 %v733_v36 }
 0x188   : > { %v750_v37 = vpop.permute.xlu1 %749  ;;  %v986_v38 = vpop.permute.xlu0 %985 }
 0x189   : > { %v988_v39 = vsel %vm970_vm2, %v984_v31, %v986_v38  ;;  %vm1036_vm2 = vcmask 506880   ;;  %v2042_v38 = vmov 0.0  }
 0x18a   : > { %1245 = vmatprep.subr.bf16.mxu1 %v988_v39 }
 0x18b   : > { %1246 = vmatpush1.bf16.msra.mxu1 %v987_v28 }
 0x18c   : > { %v1014_v40 = vpop.permute.xlu1 %1013  ;;  %v748_v41 = vpop.permute.xlu0 %747 }
 0x18d   : > { %v753_v42 = vsel %vm751_vm8, %v748_v41, %v750_v37 }
 0x18e   : > { %1218 = vmatprep.subr.bf16.mxu0 %v753_v42 }
 0x190   : > { %v1012_v43 = vpop.permute.xlu1 %1011  ;;  %v746_v32 = vpop.permute.xlu0 %745 }
 0x191   : > { %v752_v44 = vsel %vm751_vm8, %v746_v32, %v748_v41  ;;  %v1018_v48 = vsel %vm1017_vm6, %v1012_v43, %v1014_v40 }
 0x192   : > { %1219 = vmatpush1.bf16.msra.mxu0 %v752_v44  ;;  %v1360_v44 = vld [vmem:[%s2474_s4] sm:$0xff] }
 0x194   : > { %v781_v45 = vpop.permute.xlu1 %780  ;;  %v1016_v46 = vpop.permute.xlu0 %1015 }
 0x195   : > { %v1019_v47 = vsel %vm1017_vm6, %v1014_v40, %v1016_v46  ;;  %v1284_v40 = vld [vmem:[%s2473_s3] sm:$0x3] }
 0x196   : > { %1247 = vmatprep.subr.bf16.mxu1 %v1019_v47  ;;  %v1458_v46 = vld [vmem:[%s2475_s5] sm:$0x3] }
 0x197   : > { %1248 = vmatpush1.bf16.msra.mxu1 %v1018_v48 }
 0x198   : > { %v1033_v49 = vpop.permute.xlu1 %1032  ;;  %v779_v50 = vpop.permute.xlu0 %778 }
 0x199   : > { %v784_v51 = vsel %vm782_vm7, %v779_v50, %v781_v45 }
 0x19a   : > { %1220 = vmatprep.subr.bf16.mxu0 %v784_v51 }
 0x19c   : > { %v1031_v52 = vpop.permute.xlu1 %1030  ;;  %v777_v53 = vpop.permute.xlu0 %776 }
 0x19d   : > { %v783_v54 = vsel %vm782_vm7, %v777_v53, %v779_v50  ;;  %v1037_v58 = vsel %vm1036_vm2, %v1031_v52, %v1033_v49  ;;  %v1533_v53 = vld [vmem:[%s2476_s6] sm:$0xff] }
 0x19e   : > { %1221 = vmatpush1.bf16.msra.mxu0 %v783_v54 }
 0x1a0   : > { %v812_v55 = vpop.permute.xlu1 %811  ;;  %v1035_v56 = vpop.permute.xlu0 %1034 }
 0x1a1   : > { %v1038_v57 = vsel %vm1036_vm2, %v1033_v49, %v1035_v56 }
 0x1a2   : > { %1249 = vmatprep.subr.bf16.mxu1 %v1038_v57 }
 0x1a3   : > { %1250 = vmatpush1.bf16.msra.mxu1 %v1037_v58 }
 0x1a4   : > { %v1064_v59 = vpop.permute.xlu1 %1063  ;;  %v810_v60 = vpop.permute.xlu0 %809 }
 0x1a5   : > { %v815_v61 = vsel %vm813_vm9, %v810_v60, %v812_v55 }
 0x1a6   : > { %1222 = vmatprep.subr.bf16.mxu0 %v815_v61 }
 0x1a8   : > { %v1062_v62 = vpop.permute.xlu1 %1061  ;;  %v808_v63 = vpop.permute.xlu0 %807 }
 0x1a9   : > { %v814_v0 = vsel %vm813_vm9, %v808_v63, %v810_v60  ;;  %v1068_v4 = vsel %vm1067_vm10, %v1062_v62, %v1064_v59 }
 0x1aa   : > { %1223 = vmatpush1.bf16.msra.mxu0 %v814_v0 }
 0x1ac   : > { %v843_v1 = vpop.permute.xlu1 %842  ;;  %v1066_v2 = vpop.permute.xlu0 %1065 }
 0x1ad   : > { %v1069_v3 = vsel %vm1067_vm10, %v1064_v59, %v1066_v2 }
 0x1ae   : > { %1251 = vmatprep.subr.bf16.mxu1 %v1069_v3 }
 0x1af   : > { %1252 = vmatpush1.bf16.msra.mxu1 %v1068_v4 }
 0x1b0   : > { %v841_v5 = vpop.permute.xlu0 %840  ;;  %v1095_v7 = vpop.permute.xlu1 %1094 }
 0x1b1   : > { %v846_v9 = vsel %vm844_vm11, %v841_v5, %v843_v1 }
 0x1b2   : > { %1224 = vmatprep.subr.bf16.mxu0 %v846_v9 }
 0x1b4   : > { %v839_v10 = vpop.permute.xlu0 %838  ;;  %v1093_v13 = vpop.permute.xlu1 %1092 }
 0x1b5   : > { %v845_v11 = vsel %vm844_vm11, %v839_v10, %v841_v5  ;;  %v1099_v16 = vsel %vm1098_vm12, %v1093_v13, %v1095_v7 }
 0x1b6   : > { %1225 = vmatpush1.bf16.msra.mxu0 %v845_v11 }
 0x1b8   : > { %v1097_v14 = vpop.permute.xlu0 %1096 }
 0x1b9   : > { %1227 = vmatmul.mubr.bf16.vlgmr.msra.gmra.mrb[0].mxu0 %v1885_v12  ;;  %v1100_v15 = vsel %vm1098_vm12, %v1095_v7, %v1097_v14 }
 0x1ba   : > { %1253 = vmatprep.subr.bf16.mxu1 %v1100_v15 }
 0x1bb   : > { %1254 = vmatpush1.bf16.msra.mxu1 %v1099_v16 }
 0x1bc   : > { %1753 = vmatprep.subr.mxu1 %v2042_v38 }
 0x1be   : > { %1270 = vmatmul.mubr.bf16.vlgmr.msra.gmra.mrb[0].mxu1 %v1888_v17 }
 0x1bf   : > { %1755 = vmatprep.mubr.msk.f32.mxu1 %vm2043_vm13, %v2042_v38 }
 0x1c9   : > { %v1164_v6 = vpop.permute.xlu0 %1163 }
 0x1cd   : > { %v1169_v22 = vpop.permute.xlu0 %1168 }
 0x28c   : > { %v1228_v18 = vpop.f32.mrb[0].mxu0 }
 0x28d   : > { %v1230_v19 = vpop.f32.mrb[1].mxu0  ;;  %v1229_v20 = vadd.f32 %v1228_v18, %v1164_v6 }
 0x28e   : > { %v1232_v8 = vpop.f32.mrb[2].mxu0  ;;  %v1231_v21 = vadd.f32 %v1230_v19, %v1164_v6 }
 0x28f   : > { %v1234_v23 = vpop.f32.mrb[3].mxu0  ;;  %v1233_v25 = vadd.f32 %v1232_v8, %v1169_v22 }
 0x290   : > { %v1235_v30 = vadd.f32 %v1234_v23, %v1169_v22 }
 0x291   : > { %v1271_v24 = vpop.f32.mrb[0].mxu1 }
 0x292   : > { %v1272_v27 = vadd.f32 %v1271_v24, %v1229_v20  ;;  %v1273_v29 = vpop.f32.mrb[1].mxu1 }
 0x293   : > { %v1274_v31 = vadd.f32 %v1273_v29, %v1231_v21  ;;  %v1275_v33 = vpop.f32.mrb[2].mxu1 }
 0x294   : > { %v2389_v34 = vadd.f32 %v1275_v33, %v1233_v25  ;;  %v1277_v26 = vpop.f32.mrb[3].mxu1 }
 0x295   : > { %v1280_v35 = vadd.f32 %v1274_v31, %v1272_v27  ;;  %v2391_v36 = vadd.f32 %v1277_v26, %v1235_v30 }
 0x297   : > { %v1454_v37 = vadd.f32 %v2391_v36, %v2389_v34  ;;  %1281 = vadd.xlane.f32.xlu1 %v1280_v35 }
 0x299   : > { %1455 = vadd.xlane.f32.xlu0 %v1454_v37 }
 0x324   : > { %v1282_v39 = vpop.xlane.xlu1 %1281 }
 0x325   : > { %v1283_v28 = vmul.f32 0.00390625, %v1282_v39 }
 0x326   : > { %v1456_v41 = vpop.xlane.xlu0 %1455 }
 0x327   : > { %1754 = vmatpush3.msra.mxu1 %v1283_v28  ;;  %v1457_v45 = vmul.f32 0.00390625, %v1456_v41 }
 0x328   : > { %1756 = vmatmul.mubr.msk.f32.vlgmr.msra.gmra.mrb[4].mxu1 %vm1285_vm14, %v1284_v40  ;;  %1758 = vmatprep.subr.mxu1 %v2042_v38 }
 0x329   : > { %1760 = vmatprep.mubr.msk.f32.mxu1 %vm2043_vm13, %v2042_v38 }
 0x3fb   : > { %v1355_v42 = vpop.f32.mrb[4].mxu1 }
 0x3fc   : > { %v1359_v43 = vmax.f32 %v1355_v42, 0.0  ;;  %v1757_v32 = vpop.f32.mrb[5].mxu1 }
 0x3fe   : > { %1759 = vmatpush3.msk.msra.mxu1 %vm1365_vm15, %v1359_v43 }
 0x3ff   : > { %1761 = vmatmul.mubr.msk.f32.vlgmr.msra.gmra.mrb[6].mxu1 %vm1361_vm1, %v1360_v44  ;;  %1763 = vmatprep.subr.mxu1 %v2042_v38 }
 0x400   : > { %1764 = vmatpush3.msra.mxu1 %v1457_v45  ;;  %1765 = vmatprep.mubr.msk.f32.mxu1 %vm2043_vm13, %v2042_v38 }
 0x401   : > { %1768 = vmatprep.subr.mxu1 %v2042_v38 }
 0x403   : > { %1766 = vmatmul.mubr.msk.f32.vlgmr.msra.gmra.mrb[8].mxu1 %vm1285_vm14, %v1458_v46 }
 0x404   : > { %1770 = vmatprep.mubr.msk.f32.mxu1 %vm2043_vm13, %v2042_v38 }
 0x4d2   : > { %v1435_v47 = vpop.f32.mrb[6].mxu1 }
 0x4d3   : > { %v1732_v48 = vmul.f32 -1.442695, %v1435_v47  ;;  %v1762_v49 = vpop.f32.mrb[7].mxu1 }
 0x4d5   : > { %1891 = vpow2.f32 %v1732_v48 }
 0x4d6   : > { %v1528_v50 = vpop.f32.mrb[8].mxu1 }
 0x4d7   : > { %v1532_v51 = vmax.f32 %v1528_v50, 0.0  ;;  %v1767_v52 = vpop.f32.mrb[9].mxu1 }
 0x4d9   : > { %1769 = vmatpush3.msk.msra.mxu1 %vm1365_vm15, %v1532_v51 }
 0x4da   : > { %1771 = vmatmul.mubr.msk.f32.vlgmr.msra.gmra.mrb[10].mxu1 %vm1361_vm1, %v1533_v53 }
 0x4df   : > { %v1892_v54 = vpop.eup %1891 }
 0x4e0   : > { %v1442_v55 = vadd.f32 1.0, %v1892_v54 }
 0x4e2   : > { %1893 = vrcp.f32 %v1442_v55 }
 0x4ec   : > { %v1894_v56 = vpop.eup %1893 }
 0x4ed   : > { %1447 = vperm.xlu1 %1881, %v1894_v56  }
 0x56c   : > { %v1448_v57 = vpop.permute.xlu1 %1447 }
 0x56d   : > { %v1450_v58 = vmul.f32 %v1448_v57, %v1272_v27  ;;  %v1451_v59 = vmul.f32 %v1448_v57, %v1274_v31 }
 0x56f   : > { %1452 = vst [vmem:[%s286_s9] sm:$0xff] %v1450_v58  ;;  %1453 = vst [vmem:[%s286_s9 + $0x8] sm:$0xff] %v1451_v59 }
 0x5ad   : > { %v1606_v60 = vpop.f32.mrb[10].mxu1 }
 0x5ae   : > { %v1736_v61 = vmul.f32 -1.442695, %v1606_v60  ;;  %v1772_v62 = vpop.f32.mrb[11].mxu1 }
 0x5b0   : > { %1895 = vpow2.f32 %v1736_v61 }
 0x5ba   : > { %v1896_v63 = vpop.eup %1895 }
 0x5bb   : > { %v1613_v0 = vadd.f32 1.0, %v1896_v63 }
 0x5bd   : > { %1897 = vrcp.f32 %v1613_v0 }
 0x5c7   : > { %v1898_v1 = vpop.eup %1897 }
 0x5c8   : > { %1618 = vperm.xlu0 %1880, %v1898_v1  }
 0x647   : > { %v1619_v2 = vpop.permute.xlu0 %1618 }
 0x648   : > { %v1621_v3 = vmul.f32 %v1619_v2, %v2389_v34  ;;  %v1622_v4 = vmul.f32 %v1619_v2, %v2391_v36 }
 0x64a   : > { %1623 = vst [vmem:[%s286_s9 + $0x10] sm:$0xff] %v1621_v3  ;;  %1624 = vst [vmem:[%s286_s9 + $0x18] sm:$0xff] %v1622_v4 }
 0x64b   : > { %1940 = shalt.err (!%p1937_p7)
}
 0x64c   : > { %s1941_s22 = scalar_lea.hbm %s2426_s15, 512  ;;  %s1945_s9 = scalar_lea.hbm %s2477_s7, 1024 }
 0x64d   : > { %p1942_p8 = scmp.ne.s32.totalorder %s2426_s15, %s1941_s22  ;;  %p1946_p1 = scmp.lt.u32.totalorder %s2426_s15, %s2477_s7 }
 0x64e   : > { %p1947_p0 = scmp.lt.u32.totalorder %s1945_s9, %s1941_s22  ;;  %p1949_p6 = scmp.lt.u32.totalorder %s1941_s22, %s2426_s15 }
 0x64f   : > { %p1943_p11 = pnand %p1942_p8, %p2488_p9 }
 0x650   : > { %p1948_p5 = por %p1947_p0, %p1946_p1 }
 0x651   : > { %p1944_p13 = pneg %p1943_p11 }
 0x652   : > { %p1950_p10 = por %p1949_p6, %p1948_p5 }
 0x654   : > { %p1951_p12 = pnand %p1950_p10, %p1944_p13 }
 0x656   : > { %1954 = shalt.err (!%p1951_p12)
}
 0x657   : > { %s2045_s13 = smov 256  }
 0x658   : > { %1785 = dma.vmem_to_hbm [thread:$0]  (%p2488_p9), %s2419_s14, 512, %s2426_s15, %s2428_s19, %s2045_s13, %s2045_s13, %s2003_s29  }
 0x659 PF: > { %p1797_p2 = scmp.ge.s32.totalorder %s1993_s27, 2  ;;  %s1654_s28 = sand.u32 1, %s1981_s24  }
 0x65a   : > { %p2489_p3 = scmp.ne.s32.totalorder %s2482_s12, 0  ;;  %s1655_s18 = scalar_lea.sflag [#allocation6], %s1654_s28 }
 0x65c   : > { %p1792_p4 = pnand %p1797_p2, %p2489_p3 }
 0x65e   : > { %1976 = dma.done.wait (!%p1792_p4), %s1655_s18, 512  }
 0x65f   : > { %1978 = vsyncadd (!%p1792_p4), %s1655_s18, 4294966784  ;;  %p18_p7 = scmp.ge.s32.totalorder %s2111_s30, 4   ;;  %s2490_s24 = smov %s1985_s25 }
 0x660   : > { %s2491_s25 = smov %s1989_s26  ;;  %s2492_s26 = smov %s2122_s10 }
 0x661   : > { %s2493_s27 = smov %s2111_s30  ;;  %20 = sbr.rel (!%p18_p7) target bundleno = 4 (0x4), region = 88 }
 0x668   :  { %1660 = vsyncpa [#allocation5], 1 }
 0x669   :  { %1662 = vsyncpa [#allocation5 + $0x1], 1 }
 0x66a   :  { %1663 = vsyncpa [#allocation6], 1 }
 0x66b   :  { %1665 = vsyncpa [#allocation6 + $0x1], 1 }

</bundles_post_ra>
